<compile_context>
chip_gen: v6e
topology: v6e:2x2x1
jax: 0.10.0
libtpu: 0.0.40
codegen_flags: <defaults>
</compile_context>

<pallas_src>
import jax
import jax.numpy as jnp
from jax.experimental import pallas as pl
from jax.experimental.pallas import tpu as pltpu

EPS = 1e-3  # eps=0.001 in every BatchNorm2d of the module


def fused_kernel(x_ref, params_ref, w1_ref, w2_ref, o_ref):
    """x_ref: (C1, L) with L = N*H*W; params: (2*C1+C2+2*C3, 1) column;
    w1: (C2, C1); w2: (C3, C2); o_ref: (C3, L)."""
    C1 = x_ref.shape[0]
    C2 = w1_ref.shape[0]
    C3 = w2_ref.shape[0]
    L = x_ref.shape[1]
    inv_m = 1.0 / L                                   # 1 / (N*H*W)

    # ---- unpack the packed per-channel BN params (static, 8-aligned slices) --
    p = params_ref[...]                               # (2*C1+C2+2*C3, 1)
    off = 0
    g1 = p[off:off + C1]; off += C1                   # (C1, 1)
    b1 = p[off:off + C1]; off += C1
    g2 = p[off:off + C2]; off += C2                   # (C2, 1)
    g3 = p[off:off + C3]; off += C3                   # (C3, 1)
    b3 = p[off:off + C3]

    # ---- BN1 (one-pass stats, clamped) folded to scale/shift, then ReLU ------
    x = x_ref[...]                                    # (C1, L) fp32
    mean1 = jnp.sum(x, axis=1, keepdims=True) * inv_m            # (C1, 1)
    ex2_1 = jnp.sum(x * x, axis=1, keepdims=True) * inv_m
    var1 = jnp.maximum(ex2_1 - mean1 * mean1, 0.0)
    scale1 = g1 * jax.lax.rsqrt(var1 + EPS)
    shift1 = b1 - mean1 * scale1
    h = jnp.maximum(x * scale1 + shift1, 0.0)                    # (C1, L)

    # ---- conv2d5: single 2-D MXU matmul (C2,C1)@(C1,L) -----------------------
    y = jnp.dot(w1_ref[...], h, preferred_element_type=jnp.float32)  # (C2, L)

    # ---- BN2: only its per-channel *scale* matters downstream ----------------
    # (its shift becomes a per-output-channel constant after the bias-free
    #  conv2d6, which BN3's batch-mean subtraction cancels exactly, so beta2
    #  and the mean subtraction are never applied)
    mean2 = jnp.sum(y, axis=1, keepdims=True) * inv_m
    ex2_2 = jnp.sum(y * y, axis=1, keepdims=True) * inv_m
    var2 = jnp.maximum(ex2_2 - mean2 * mean2, 0.0)
    scale2 = g2 * jax.lax.rsqrt(var2 + EPS)                      # (C2, 1)
    y_s = y * scale2                                             # (C2, L)

    # ---- conv2d6: single 2-D MXU matmul (C3,C2)@(C2,L), no weight transpose --
    z = jnp.dot(w2_ref[...], y_s, preferred_element_type=jnp.float32)  # (C3, L)

    # ---- BN3 (one-pass stats, clamped) folded to scale/shift -----------------
    mean3 = jnp.sum(z, axis=1, keepdims=True) * inv_m
    ex2_3 = jnp.sum(z * z, axis=1, keepdims=True) * inv_m
    var3 = jnp.maximum(ex2_3 - mean3 * mean3, 0.0)
    scale3 = g3 * jax.lax.rsqrt(var3 + EPS)
    shift3 = b3 - mean3 * scale3
    o_ref[...] = (z * scale3 + shift3).astype(o_ref.dtype)


@jax.jit
def module_forward(x_nchw, g1, b1, w1_oihw, g2, b2, w2_oihw, g3, b3):
    """Pallas implementation of M.forward.  x_nchw: (N, 64, H, W) float32."""
    N, C1, H, W = x_nchw.shape
    C2 = w1_oihw.shape[0]         # 24
    C3 = w2_oihw.shape[0]         # 72
    L = N * H * W

    # Channels on sublanes, batch*spatial on lanes: one cheap XLA transpose in,
    # one out; inside the kernel everything is a single lane-dense 2-D slab.
    x2d = jnp.transpose(x_nchw, (1, 0, 2, 3)).reshape(C1, L)

    w1 = w1_oihw.reshape(C2, C1)          # (Cout, Cin)
    w2 = w2_oihw.reshape(C3, C2)          # (Cout, Cin) -- no transpose needed

    # Pack the five per-channel BN vectors into ONE (2*C1+C2+2*C3, 1) column
    # (all slice offsets are multiples of 8, so in-kernel slicing is tile
    # aligned).  BN2's beta provably cancels (bias-free conv2d6 + BN3 batch
    # mean subtraction), so it is not shipped.
    params = jnp.concatenate([g1, b1, g2, g3, b3]).reshape(-1, 1)
    del b2

    # Rough live fp32 working set inside the kernel: x + h + y(+y_s) + z + out.
    live_bytes = 4 * L * (2 * C1 + 2 * C2 + 2 * C3)
    # Cap well below v7x's 64 MiB physical VMEM; 16 MiB floor is plenty here.
    vmem_limit = int(max(16 * 2**20, min(48 * 2**20, 4 * live_bytes)))
    # TODO(synk): for inputs with N*H*W >~ 3e4 (v7x VMEM ceiling) split this
    # monolithic kernel into a two-pass gridded design: pass 1 accumulates
    # per-channel sum/sumsq over lane chunks ('arbitrary' reduction axis),
    # pass 2 applies BN + matmuls per chunk ('parallel' chunk axis).

    flops = 2 * L * (C1 * C2 + C2 * C3) + 10 * L * (C1 + C2 + C3)
    bytes_accessed = 4 * (L * (C1 + C3) + C1 * C2 + C2 * C3
                          + 2 * C1 + C2 + 2 * C3)

    out2d = pl.pallas_call(
        fused_kernel,
        out_shape=jax.ShapeDtypeStruct((C3, L), jnp.float32),
        in_specs=[pl.BlockSpec(memory_space=pltpu.MemorySpace.VMEM)] * 4,
        out_specs=pl.BlockSpec(memory_space=pltpu.MemorySpace.VMEM),
        compiler_params=pltpu.CompilerParams(vmem_limit_bytes=vmem_limit),
        cost_estimate=pl.CostEstimate(flops=flops,
                                      transcendentals=C1 + C2 + C3,
                                      bytes_accessed=bytes_accessed),
    )(x2d, params, w1, w2)

    # (C3, N*H*W) -> (N, C3, H, W)
    return jnp.transpose(out2d.reshape(C3, N, H, W), (1, 0, 2, 3))


def reference_forward(x_nchw, g1, b1, w1_oihw, g2, b2, w2_oihw, g3, b3):
    """Pure-JAX reference with the module's literal semantics (sanity check)."""
    def bn(v, g, b):
        mean = jnp.mean(v, axis=(0, 2, 3), keepdims=True)
        var = jnp.mean((v - mean) ** 2, axis=(0, 2, 3), keepdims=True)
        return ((v - mean) * jax.lax.rsqrt(var + EPS)
                * g.reshape(1, -1, 1, 1) + b.reshape(1, -1, 1, 1))

    C1 = x_nchw.shape[1]
    C2 = w1_oihw.shape[0]
    C3 = w2_oihw.shape[0]
    h = jnp.maximum(bn(x_nchw, g1, b1), 0.0)
    y = jnp.einsum('nchw,oc->nohw', h, w1_oihw.reshape(C2, C1))
    y = bn(y, g2, b2)
    z = jnp.einsum('nchw,oc->nohw', y, w2_oihw.reshape(C3, C2))
    return bn(z, g3, b3)


if __name__ == "__main__":
    key = jax.random.PRNGKey(0)
    ks = jax.random.split(key, 10)

    # Channel sizes fixed by the module (64 -> 24 -> 72); batch/spatial small.
    N, H, W = 2, 16, 16
    x = jax.random.normal(ks[0], (N, 64, H, W), jnp.float32)

    g1 = 1.0 + 0.1 * jax.random.normal(ks[1], (64,), jnp.float32)
    b1 = 0.1 * jax.random.normal(ks[2], (64,), jnp.float32)
    w1_oihw = 0.1 * jax.random.normal(ks[3], (24, 64, 1, 1), jnp.float32)
    g2 = 1.0 + 0.1 * jax.random.normal(ks[4], (24,), jnp.float32)
    b2 = 0.1 * jax.random.normal(ks[5], (24,), jnp.float32)
    w2_oihw = 0.1 * jax.random.normal(ks[6], (72, 24, 1, 1), jnp.float32)
    g3 = 1.0 + 0.1 * jax.random.normal(ks[7], (72,), jnp.float32)
    b3 = 0.1 * jax.random.normal(ks[8], (72,), jnp.float32)

    out = module_forward(x, g1, b1, w1_oihw, g2, b2, w2_oihw, g3, b3)
    out = jax.block_until_ready(out)

    ref = reference_forward(x, g1, b1, w1_oihw, g2, b2, w2_oihw, g3, b3)
    assert out.shape == (N, 72, H, W)
    assert jnp.allclose(out, ref, atol=2e-4, rtol=2e-4), "mismatch vs reference"

    print("KERNEL_OK")
</pallas_src>

<mosaic_0001>
module attributes {stable_mosaic.version = 11 : i64} {
  func.func @fused_kernel(%arg0: memref<64x512xf32, #tpu.memory_space<vmem>>, %arg1: memref<296x1xf32, #tpu.memory_space<vmem>>, %arg2: memref<24x64xf32, #tpu.memory_space<vmem>>, %arg3: memref<72x24xf32, #tpu.memory_space<vmem>>, %arg4: memref<72x512xf32, #tpu.memory_space<vmem>>) attributes {dimension_semantics = [], scalar_prefetch = 0 : i64, scratch_operands = 0 : i64, tpu.core_type = #tpu.core_type<tc>} {
    %c0 = arith.constant 0 : index
    %c0_0 = arith.constant 0 : index
    %0 = vector.load %arg1[%c0, %c0_0] : memref<296x1xf32, #tpu.memory_space<vmem>>, vector<296x1xf32>
    %1 = vector.extract_strided_slice %0 {offsets = [0, 0], sizes = [64, 1], strides = [1, 1]} : vector<296x1xf32> to vector<64x1xf32>
    %2 = vector.extract_strided_slice %0 {offsets = [64, 0], sizes = [64, 1], strides = [1, 1]} : vector<296x1xf32> to vector<64x1xf32>
    %3 = vector.extract_strided_slice %0 {offsets = [128, 0], sizes = [24, 1], strides = [1, 1]} : vector<296x1xf32> to vector<24x1xf32>
    %4 = vector.extract_strided_slice %0 {offsets = [152, 0], sizes = [72, 1], strides = [1, 1]} : vector<296x1xf32> to vector<72x1xf32>
    %5 = vector.extract_strided_slice %0 {offsets = [224, 0], sizes = [72, 1], strides = [1, 1]} : vector<296x1xf32> to vector<72x1xf32>
    %c0_1 = arith.constant 0 : index
    %c0_2 = arith.constant 0 : index
    %6 = vector.load %arg0[%c0_1, %c0_2] : memref<64x512xf32, #tpu.memory_space<vmem>>, vector<64x512xf32>
    %cst = arith.constant dense<0.000000e+00> : vector<64xf32>
    %7 = vector.multi_reduction <add>, %6, %cst [1] : vector<64x512xf32> to vector<64xf32>
    %8 = vector.shape_cast %7 : vector<64xf32> to vector<64x1xf32>
    %cst_3 = arith.constant 0.001953125 : f32
    %9 = vector.broadcast %cst_3 : f32 to vector<64x1xf32>
    %10 = arith.mulf %8, %9 : vector<64x1xf32>
    %11 = arith.mulf %6, %6 : vector<64x512xf32>
    %cst_4 = arith.constant dense<0.000000e+00> : vector<64xf32>
    %12 = vector.multi_reduction <add>, %11, %cst_4 [1] : vector<64x512xf32> to vector<64xf32>
    %13 = vector.shape_cast %12 : vector<64xf32> to vector<64x1xf32>
    %cst_5 = arith.constant 0.001953125 : f32
    %14 = vector.broadcast %cst_5 : f32 to vector<64x1xf32>
    %15 = arith.mulf %13, %14 : vector<64x1xf32>
    %16 = arith.mulf %10, %10 : vector<64x1xf32>
    %17 = arith.subf %15, %16 : vector<64x1xf32>
    %cst_6 = arith.constant 0.000000e+00 : f32
    %18 = vector.broadcast %cst_6 : f32 to vector<64x1xf32>
    %19 = arith.maximumf %17, %18 : vector<64x1xf32>
    %cst_7 = arith.constant 1.000000e-03 : f32
    %20 = vector.broadcast %cst_7 : f32 to vector<64x1xf32>
    %21 = arith.addf %19, %20 : vector<64x1xf32>
    %22 = math.rsqrt %21 : vector<64x1xf32>
    %23 = arith.mulf %1, %22 : vector<64x1xf32>
    %24 = arith.mulf %10, %23 : vector<64x1xf32>
    %25 = arith.subf %2, %24 : vector<64x1xf32>
    %26 = vector.broadcast %23 : vector<64x1xf32> to vector<64x512xf32>
    %27 = arith.mulf %6, %26 : vector<64x512xf32>
    %28 = vector.broadcast %25 : vector<64x1xf32> to vector<64x512xf32>
    %29 = arith.addf %27, %28 : vector<64x512xf32>
    %cst_8 = arith.constant 0.000000e+00 : f32
    %30 = vector.broadcast %cst_8 : f32 to vector<64x512xf32>
    %31 = arith.maximumf %29, %30 : vector<64x512xf32>
    %c0_9 = arith.constant 0 : index
    %c0_10 = arith.constant 0 : index
    %32 = vector.load %arg2[%c0_9, %c0_10] : memref<24x64xf32, #tpu.memory_space<vmem>>, vector<24x64xf32>
    %cst_11 = arith.constant dense<0.000000e+00> : vector<24x512xf32>
    %33 = tpu.matmul %32, %31, %cst_11 {dimension_numbers = #tpu.dot_dimension_numbers<[1], [0], [0], [1], [0, 0, 1, 1], [], []>} : vector<24x64xf32>, vector<64x512xf32>, vector<24x512xf32> -> vector<24x512xf32>
    %cst_12 = arith.constant dense<0.000000e+00> : vector<24xf32>
    %34 = vector.multi_reduction <add>, %33, %cst_12 [1] : vector<24x512xf32> to vector<24xf32>
    %35 = vector.shape_cast %34 : vector<24xf32> to vector<24x1xf32>
    %cst_13 = arith.constant 0.001953125 : f32
    %36 = vector.broadcast %cst_13 : f32 to vector<24x1xf32>
    %37 = arith.mulf %35, %36 : vector<24x1xf32>
    %38 = arith.mulf %33, %33 : vector<24x512xf32>
    %cst_14 = arith.constant dense<0.000000e+00> : vector<24xf32>
    %39 = vector.multi_reduction <add>, %38, %cst_14 [1] : vector<24x512xf32> to vector<24xf32>
    %40 = vector.shape_cast %39 : vector<24xf32> to vector<24x1xf32>
    %cst_15 = arith.constant 0.001953125 : f32
    %41 = vector.broadcast %cst_15 : f32 to vector<24x1xf32>
    %42 = arith.mulf %40, %41 : vector<24x1xf32>
    %43 = arith.mulf %37, %37 : vector<24x1xf32>
    %44 = arith.subf %42, %43 : vector<24x1xf32>
    %cst_16 = arith.constant 0.000000e+00 : f32
    %45 = vector.broadcast %cst_16 : f32 to vector<24x1xf32>
    %46 = arith.maximumf %44, %45 : vector<24x1xf32>
    %cst_17 = arith.constant 1.000000e-03 : f32
    %47 = vector.broadcast %cst_17 : f32 to vector<24x1xf32>
    %48 = arith.addf %46, %47 : vector<24x1xf32>
    %49 = math.rsqrt %48 : vector<24x1xf32>
    %50 = arith.mulf %3, %49 : vector<24x1xf32>
    %51 = vector.broadcast %50 : vector<24x1xf32> to vector<24x512xf32>
    %52 = arith.mulf %33, %51 : vector<24x512xf32>
    %c0_18 = arith.constant 0 : index
    %c0_19 = arith.constant 0 : index
    %53 = vector.load %arg3[%c0_18, %c0_19] : memref<72x24xf32, #tpu.memory_space<vmem>>, vector<72x24xf32>
    %cst_20 = arith.constant dense<0.000000e+00> : vector<72x512xf32>
    %54 = tpu.matmul %53, %52, %cst_20 {dimension_numbers = #tpu.dot_dimension_numbers<[1], [0], [0], [1], [0, 0, 1, 1], [], []>} : vector<72x24xf32>, vector<24x512xf32>, vector<72x512xf32> -> vector<72x512xf32>
    %cst_21 = arith.constant dense<0.000000e+00> : vector<72xf32>
    %55 = vector.multi_reduction <add>, %54, %cst_21 [1] : vector<72x512xf32> to vector<72xf32>
    %56 = vector.shape_cast %55 : vector<72xf32> to vector<72x1xf32>
    %cst_22 = arith.constant 0.001953125 : f32
    %57 = vector.broadcast %cst_22 : f32 to vector<72x1xf32>
    %58 = arith.mulf %56, %57 : vector<72x1xf32>
    %59 = arith.mulf %54, %54 : vector<72x512xf32>
    %cst_23 = arith.constant dense<0.000000e+00> : vector<72xf32>
    %60 = vector.multi_reduction <add>, %59, %cst_23 [1] : vector<72x512xf32> to vector<72xf32>
    %61 = vector.shape_cast %60 : vector<72xf32> to vector<72x1xf32>
    %cst_24 = arith.constant 0.001953125 : f32
    %62 = vector.broadcast %cst_24 : f32 to vector<72x1xf32>
    %63 = arith.mulf %61, %62 : vector<72x1xf32>
    %64 = arith.mulf %58, %58 : vector<72x1xf32>
    %65 = arith.subf %63, %64 : vector<72x1xf32>
    %cst_25 = arith.constant 0.000000e+00 : f32
    %66 = vector.broadcast %cst_25 : f32 to vector<72x1xf32>
    %67 = arith.maximumf %65, %66 : vector<72x1xf32>
    %cst_26 = arith.constant 1.000000e-03 : f32
    %68 = vector.broadcast %cst_26 : f32 to vector<72x1xf32>
    %69 = arith.addf %67, %68 : vector<72x1xf32>
    %70 = math.rsqrt %69 : vector<72x1xf32>
    %71 = arith.mulf %4, %70 : vector<72x1xf32>
    %72 = arith.mulf %58, %71 : vector<72x1xf32>
    %73 = arith.subf %5, %72 : vector<72x1xf32>
    %74 = vector.broadcast %71 : vector<72x1xf32> to vector<72x512xf32>
    %75 = arith.mulf %54, %74 : vector<72x512xf32>
    %76 = vector.broadcast %73 : vector<72x1xf32> to vector<72x512xf32>
    %77 = arith.addf %75, %76 : vector<72x512xf32>
    %c0_27 = arith.constant 0 : index
    %c0_28 = arith.constant 0 : index
    %78 = vector.load %arg4[%c0_27, %c0_28] : memref<72x512xf32, #tpu.memory_space<vmem>>, vector<72x512xf32>
    tpu.vector_store %arg4[%c0_27, %c0_28], %77 {strides = array<i32>} : memref<72x512xf32, #tpu.memory_space<vmem>>, vector<72x512xf32>,
    return
  }
}

</mosaic_0001>

<bundles_post_ra>
// kernel: module_forward.1
= control target key start
LH: loop header
LB: loop body
LE: loop exit
PB: predicated region body
PF: predicated region fallthrough
CT: control target
= control target key end

     0   :  { %vm457_vm0 = vcmask 523264   ;;  %vm735_vm1 = vcmask 195584   ;;  %s2491_s0 = inlined_call_operand.vmem [shape: f32[64,512], index: 0, kind: input, shape index: {}]   ;;  %s2492_s1 = inlined_call_operand.vmem [shape: f32[296,1], index: 1, kind: input, shape index: {}]   ;;  %s2493_s2 = inlined_call_operand.vmem [shape: f32[24,64], index: 2, kind: input, shape index: {}]   ;;  %s2494_s3 = inlined_call_operand.vmem [shape: f32[72,24], index: 3, kind: input, shape index: {}]   ;;  %s2495_s4 = inlined_call_operand.vmem [shape: f32[72,512], index: 4, kind: output, shape index: {}]  }
   0x1   :  { %v1517_v0 = vld [vmem:[%s2491_s0 + $0xe0] sm:$0xff]  ;;  %v1522_v1 = vld [vmem:[%s2491_s0 + $0xe8] sm:$0xff]  ;;  %v1527_v2 = vld [vmem:[%s2491_s0 + $0xf0] sm:$0xff] }
   0x2   :  { %v121_v3 = vadd.f32 %v1522_v1, %v1517_v0  ;;  %v1534_v4 = vld [vmem:[%s2491_s0 + $0xa0] sm:$0xff]  ;;  %v1539_v5 = vld [vmem:[%s2491_s0 + $0xa8] sm:$0xff]  ;;  %v162_v6 = vmul.f32 %v1517_v0, %v1517_v0  ;;  %v163_v7 = vmul.f32 %v1522_v1, %v1522_v1  ;;  %v1548_v8 = vld [vmem:[%s2491_s0 + $0xf8] sm:$0xff]  ;;  %v164_v12 = vmul.f32 %v1527_v2, %v1527_v2 }
   0x3   :  { %v1553_v9 = vld [vmem:[%s2491_s0 + $0xb0] sm:$0xff]  ;;  %v111_v10 = vadd.f32 %v1539_v5, %v1534_v4  ;;  %v1560_v11 = vld [vmem:[%s2491_s0 + $0xc0] sm:$0xff]  ;;  %v154_v13 = vmul.f32 %v1534_v4, %v1534_v4  ;;  %v1570_v15 = vld [vmem:[%s2491_s0 + $0xb8] sm:$0xff]  ;;  %v155_v20 = vmul.f32 %v1539_v5, %v1539_v5  ;;  %v165_v31 = vmul.f32 %v1548_v8, %v1548_v8 }
   0x4   :  { %v122_v14 = vadd.f32 %v121_v3, %v1527_v2  ;;  %v1575_v16 = vld [vmem:[%s2491_s0 + $0xc8] sm:$0xff]  ;;  %v1580_v17 = vld [vmem:[%s2491_s0 + $0xd0] sm:$0xff]  ;;  %v158_v18 = vmul.f32 %v1560_v11, %v1560_v11  ;;  %v201_v19 = vadd.f32 %v163_v7, %v162_v6  ;;  %v1592_v23 = vld [vmem:[%s2491_s0 + $0x80] sm:$0xff]  ;;  %v156_v32 = vmul.f32 %v1553_v9, %v1553_v9 }
   0x5   :  { %v112_v21 = vadd.f32 %v111_v10, %v1553_v9  ;;  %v116_v22 = vadd.f32 %v1575_v16, %v1560_v11  ;;  %v1597_v24 = vld [vmem:[%s2491_s0 + $0x88] sm:$0xff]  ;;  %v1602_v25 = vld [vmem:[%s2491_s0 + $0x90] sm:$0xff]  ;;  %v159_v26 = vmul.f32 %v1575_v16, %v1575_v16  ;;  %v160_v27 = vmul.f32 %v1580_v17, %v1580_v17  ;;  %v1612_v29 = vld [vmem:[%s2491_s0 + $0xd8] sm:$0xff] }
   0x6   :  { %v123_v28 = vadd.f32 %v122_v14, %v1548_v8  ;;  %v106_v30 = vadd.f32 %v1597_v24, %v1592_v23  ;;  %v1623_v33 = vld [vmem:[%s2491_s0 + $0x60] sm:$0xff]  ;;  %v1628_v34 = vld [vmem:[%s2491_s0 + $0x68] sm:$0xff]  ;;  %v1635_v37 = vld [vmem:[%s2491_s0 + $0x98] sm:$0xff]  ;;  %v161_v38 = vmul.f32 %v1612_v29, %v1612_v29  ;;  %v202_v41 = vadd.f32 %v201_v19, %v164_v12 }
   0x7   :  { %v113_v35 = vadd.f32 %v112_v21, %v1570_v15  ;;  %v117_v36 = vadd.f32 %v116_v22, %v1580_v17  ;;  %v196_v39 = vadd.f32 %v159_v26, %v158_v18  ;;  %v191_v42 = vadd.f32 %v155_v20, %v154_v13  ;;  %v1645_v44 = vld [vmem:[%s2491_s0 + $0x40] sm:$0xff]  ;;  %v1650_v45 = vld [vmem:[%s2491_s0 + $0x48] sm:$0xff]  ;;  %v1663_v52 = vld [vmem:[%s2491_s0 + $0x70] sm:$0xff] }
   0x8   :  { %124 = vadd.xlane.f32.xlu0 %v123_v28  ;;  %v107_v40 = vadd.f32 %v106_v30, %v1602_v25  ;;  %v101_v43 = vadd.f32 %v1628_v34, %v1623_v33  ;;  %v150_v48 = vmul.f32 %v1592_v23, %v1592_v23  ;;  %v151_v49 = vmul.f32 %v1597_v24, %v1597_v24  ;;  %v1672_v58 = vld [vmem:[%s2491_s0 + $0x50] sm:$0xff]  ;;  %v1682_v63 = vld [vmem:[%s2491_s0 + $0x78] sm:$0xff]  ;;  %v1687_v3 = vld [vmem:[%s2491_s0 + $0x20] sm:$0xff] }
   0x9   :  { %114 = vadd.xlane.f32.xlu1 %v113_v35  ;;  %v118_v46 = vadd.f32 %v117_v36, %v1612_v29  ;;  %v197_v47 = vadd.f32 %v196_v39, %v160_v27  ;;  %v157_v51 = vmul.f32 %v1570_v15, %v1570_v15  ;;  %v192_v53 = vadd.f32 %v191_v42, %v156_v32  ;;  %v1692_v6 = vld [vmem:[%s2491_s0 + $0x28] sm:$0xff]  ;;  %v1700_v14 = vld [vmem:[%s2491_s0 + $0x58] sm:$0xff]  ;;  %v1714_v27 = vld [vmem:[%s2491_s0 + $0x30] sm:$0xff] }
   0xa   :  { %v108_v50 = vadd.f32 %v107_v40, %v1635_v37  ;;  %v152_v54 = vmul.f32 %v1602_v25, %v1602_v25  ;;  %v186_v55 = vadd.f32 %v151_v49, %v150_v48  ;;  %v96_v56 = vadd.f32 %v1650_v45, %v1645_v44  ;;  %v1719_v28 = vld [vmem:[%s2491_s0] sm:$0xff]  ;;  %v1724_v30 = vld [vmem:[%s2491_s0 + $0x8] sm:$0xff]  ;;  %v1745_v48 = vld [vmem:[%s2491_s0 + $0x38] sm:$0xff] }
   0xb   :  { %v198_v57 = vadd.f32 %v197_v47, %v161_v38  ;;  %v146_v59 = vmul.f32 %v1623_v33, %v1623_v33  ;;  %v147_v60 = vmul.f32 %v1628_v34, %v1628_v34  ;;  %v203_v61 = vadd.f32 %v202_v41, %v165_v31  ;;  %v1750_v49 = vld [vmem:[%s2491_s0 + $0x10] sm:$0xff] }
   0xc   :  { %119 = vadd.xlane.f32.xlu0 %v118_v46  ;;  %v102_v62 = vadd.f32 %v101_v43, %v1663_v52  ;;  %v193_v7 = vadd.f32 %v192_v53, %v157_v51  ;;  %v153_v10 = vmul.f32 %v1635_v37, %v1635_v37  ;;  %v187_v12 = vadd.f32 %v186_v55, %v152_v54 }
   0xd   :  { %109 = vadd.xlane.f32.xlu1 %v108_v50  ;;  %v97_v13 = vadd.f32 %v96_v56, %v1672_v58  ;;  %v148_v18 = vmul.f32 %v1663_v52, %v1663_v52  ;;  %v181_v19 = vadd.f32 %v147_v60, %v146_v59  ;;  %v142_v20 = vmul.f32 %v1645_v44, %v1645_v44 }
   0xe   :  { %v143_v21 = vmul.f32 %v1650_v45, %v1650_v45  ;;  %v103_v22 = vadd.f32 %v102_v62, %v1682_v63  ;;  %v91_v26 = vadd.f32 %v1692_v6, %v1687_v3  ;;  %v188_v31 = vadd.f32 %v187_v12, %v153_v10 }
   0xf   :  { %v98_v32 = vadd.f32 %v97_v13, %v1700_v14  ;;  %v149_v35 = vmul.f32 %v1682_v63, %v1682_v63  ;;  %v144_v36 = vmul.f32 %v1672_v58, %v1672_v58  ;;  %v182_v38 = vadd.f32 %v181_v19, %v148_v18 }
  0x10   :  { %199 = vadd.xlane.f32.xlu0 %v198_v57  ;;  %v176_v39 = vadd.f32 %v143_v21, %v142_v20  ;;  %v138_v40 = vmul.f32 %v1687_v3, %v1687_v3  ;;  %v139_v41 = vmul.f32 %v1692_v6, %v1692_v6  ;;  %v92_v42 = vadd.f32 %v91_v26, %v1714_v27 }
  0x11   :  { %204 = vadd.xlane.f32.xlu1 %v203_v61  ;;  %v86_v43 = vadd.f32 %v1724_v30, %v1719_v28  ;;  %v134_v46 = vmul.f32 %v1719_v28, %v1719_v28  ;;  %v135_v47 = vmul.f32 %v1724_v30, %v1724_v30  ;;  %v145_v50 = vmul.f32 %v1700_v14, %v1700_v14  ;;  %v1763_v61 = vld [vmem:[%s2491_s0 + $0x18] sm:$0xff] }
  0x12   :  { %v183_v51 = vadd.f32 %v182_v38, %v149_v35  ;;  %v177_v53 = vadd.f32 %v176_v39, %v144_v36  ;;  %v140_v54 = vmul.f32 %v1714_v27, %v1714_v27  ;;  %v171_v55 = vadd.f32 %v139_v41, %v138_v40 }
  0x13   :  { %v93_v56 = vadd.f32 %v92_v42, %v1745_v48  ;;  %v87_v57 = vadd.f32 %v86_v43, %v1750_v49  ;;  %v136_v59 = vmul.f32 %v1750_v49, %v1750_v49  ;;  %v166_v60 = vadd.f32 %v135_v47, %v134_v46 }
  0x14   :  { %194 = vadd.xlane.f32.xlu0 %v193_v7  ;;  %v178_v62 = vadd.f32 %v177_v53, %v145_v50  ;;  %v141_v7 = vmul.f32 %v1745_v48, %v1745_v48  ;;  %v172_v10 = vadd.f32 %v171_v55, %v140_v54  ;;  %v137_v13 = vmul.f32 %v1763_v61, %v1763_v61 }
  0x15   :  { %104 = vadd.xlane.f32.xlu1 %v103_v22  ;;  %v88_v12 = vadd.f32 %v87_v57, %v1763_v61  ;;  %v167_v18 = vadd.f32 %v166_v60, %v136_v59  ;;  %v1487_v21 = vmov 0  }
  0x16   :  { %v173_v19 = vadd.f32 %v172_v10, %v141_v7  ;;  %1446 = vset.pattern.permute.xlu1 %v1487_v21  ;;  %1445 = vset.pattern.permute.xlu0 %v1487_v21 }
  0x17   :  { %v168_v20 = vadd.f32 %v167_v18, %v137_v13 }
  0x18   :  { %189 = vadd.xlane.f32.xlu0 %v188_v31 }
  0x19   :  { %99 = vadd.xlane.f32.xlu1 %v98_v32 }
  0x1c   :  { %184 = vadd.xlane.f32.xlu0 %v183_v51 }
  0x1d   :  { %94 = vadd.xlane.f32.xlu1 %v93_v56 }
  0x20   :  { %179 = vadd.xlane.f32.xlu0 %v178_v62 }
  0x21   :  { %89 = vadd.xlane.f32.xlu1 %v88_v12 }
  0x24   :  { %174 = vadd.xlane.f32.xlu0 %v173_v19 }
  0x25   :  { %169 = vadd.xlane.f32.xlu1 %v168_v20 }
  0x91   :  { %v125_v22 = vpop.xlane.xlu0 %124 }
  0x92   :  { %v115_v26 = vpop.xlane.xlu1 %114  ;;  %v1772_v36 = vmul.f32 0.001953125, %v125_v22 }
  0x93   :  { %v1774_v39 = vmul.f32 0.001953125, %v115_v26 }
  0x94   :  { %v221_v43 = vmul.f32 %v1772_v36, %v1772_v36 }
  0x95   :  { %v120_v31 = vpop.xlane.xlu0 %119  ;;  %v219_v53 = vmul.f32 %v1774_v39, %v1774_v39 }
  0x96   :  { %v1770_v32 = vmul.f32 0.001953125, %v120_v31  ;;  %v110_v35 = vpop.xlane.xlu1 %109 }
  0x97   :  { %v1782_v54 = vmul.f32 0.001953125, %v110_v35 }
  0x98   :  { %v220_v40 = vmul.f32 %v1770_v32, %v1770_v32 }
  0x99   :  { %v200_v38 = vpop.xlane.xlu0 %199  ;;  %v218_v13 = vmul.f32 %v1782_v54, %v1782_v54 }
  0x9a   :  { %v212_v41 = vmul.f32 0.001953125, %v200_v38  ;;  %v205_v42 = vpop.xlane.xlu1 %204 }
  0x9b   :  { %v213_v46 = vmul.f32 0.001953125, %v205_v42 }
  0x9c   :  { %v228_v47 = vsub.f32 %v212_v41, %v220_v40 }
  0x9d   :  { %v229_v50 = vsub.f32 %v213_v46, %v221_v43  ;;  %v195_v51 = vpop.xlane.xlu0 %194 }
  0x9e   :  { %v236_v55 = vmax.f32 %v228_v47, 0.0  ;;  %v211_v56 = vmul.f32 0.001953125, %v195_v51  ;;  %v105_v57 = vpop.xlane.xlu1 %104 }
  0x9f   :  { %v237_v59 = vmax.f32 %v229_v50, 0.0  ;;  %v1784_v7 = vmul.f32 0.001953125, %v105_v57 }
  0xa0   :  { %v244_v60 = vadd.f32 0.001, %v236_v55  ;;  %v227_v62 = vsub.f32 %v211_v56, %v219_v53 }
  0xa1   :  { %v245_v10 = vadd.f32 0.001, %v237_v59  ;;  %v190_v12 = vpop.xlane.xlu0 %189  ;;  %v217_v22 = vmul.f32 %v1784_v7, %v1784_v7 }
  0xa2   :  { %1447 = vrsqrt.f32 %v244_v60  ;;  %v235_v18 = vmax.f32 %v227_v62, 0.0  ;;  %v210_v19 = vmul.f32 0.001953125, %v190_v12  ;;  %v100_v20 = vpop.xlane.xlu1 %99  ;;  %v23_v12 = vld [vmem:[%s2492_s1 + $0x30] sm:$0xff] }
  0xa3   :  { %1449 = vrsqrt.f32 %v245_v10  ;;  %v1790_v31 = vmul.f32 0.001953125, %v100_v20  ;;  %v24_v20 = vld [vmem:[%s2492_s1 + $0x38] sm:$0xff] }
  0xa4   :  { %v243_v21 = vadd.f32 0.001, %v235_v18  ;;  %v226_v26 = vsub.f32 %v210_v19, %v218_v13 }
  0xa5   :  { %v185_v35 = vpop.xlane.xlu0 %184  ;;  %v216_v43 = vmul.f32 %v1790_v31, %v1790_v31 }
  0xa6   :  { %1451 = vrsqrt.f32 %v243_v21  ;;  %v234_v38 = vmax.f32 %v226_v26, 0.0  ;;  %v209_v40 = vmul.f32 0.001953125, %v185_v35  ;;  %v95_v41 = vpop.xlane.xlu1 %94 }
  0xa7   :  { %v1794_v47 = vmul.f32 0.001953125, %v95_v41 }
  0xa8   :  { %v242_v42 = vadd.f32 0.001, %v234_v38  ;;  %v225_v46 = vsub.f32 %v209_v40, %v217_v22 }
  0xa9   :  { %v180_v50 = vpop.xlane.xlu0 %179  ;;  %v215_v59 = vmul.f32 %v1794_v47, %v1794_v47 }
  0xaa   :  { %1453 = vrsqrt.f32 %v242_v42  ;;  %v233_v51 = vmax.f32 %v225_v46, 0.0  ;;  %v208_v53 = vmul.f32 0.001953125, %v180_v50  ;;  %v90_v55 = vpop.xlane.xlu1 %89 }
  0xab   :  { %v1796_v56 = vmul.f32 0.001953125, %v90_v55 }
  0xac   :  { %v241_v57 = vadd.f32 0.001, %v233_v51  ;;  %v224_v60 = vsub.f32 %v208_v53, %v216_v43  ;;  %v22_v43 = vld [vmem:[%s2492_s1 + $0x28] sm:$0xff] }
  0xad   :  { %v214_v62 = vmul.f32 %v1796_v56, %v1796_v56  ;;  %v175_v10 = vpop.xlane.xlu0 %174 }
  0xae   :  { %1455 = vrsqrt.f32 %v241_v57  ;;  %v232_v13 = vmax.f32 %v224_v60, 0.0  ;;  %v207_v18 = vmul.f32 0.001953125, %v175_v10  ;;  %v170_v19 = vpop.xlane.xlu1 %169  ;;  %v20_v10 = vld [vmem:[%s2492_s1 + $0x18] sm:$0xff] }
  0xaf   :  { %v1448_v21 = vpop.eup %1447  ;;  %v206_v22 = vmul.f32 0.001953125, %v170_v19  ;;  %v19_v19 = vld [vmem:[%s2492_s1 + $0x10] sm:$0xff] }
  0xb0   :  { %v1450_v26 = vpop.eup %1449  ;;  %v240_v35 = vadd.f32 0.001, %v232_v13  ;;  %v223_v38 = vsub.f32 %v207_v18, %v215_v59  ;;  %v260_v40 = vmul.f32 %v1448_v21, %v23_v12  ;;  %v21_v59 = vld [vmem:[%s2492_s1 + $0x20] sm:$0xff] }
  0xb1   :  { %v222_v41 = vsub.f32 %v206_v22, %v214_v62  ;;  %v261_v42 = vmul.f32 %v1450_v26, %v24_v20  ;;  %v32_v20 = vld [vmem:[%s2492_s1 + $0x78] sm:$0xff] }
  0xb2   :  { %1457 = vrsqrt.f32 %v240_v35  ;;  %v231_v46 = vmax.f32 %v223_v38, 0.0  ;;  %310 = vperm.xlu1 %1446, %v260_v40   ;;  %v268_v35 = vmul.f32 %v260_v40, %v1770_v32  ;;  %v18_v38 = vld [vmem:[%s2492_s1 + $0x8] sm:$0xff] }
  0xb3   :  { %v1452_v50 = vpop.eup %1451  ;;  %v230_v51 = vmax.f32 %v222_v41, 0.0  ;;  %315 = vperm.xlu0 %1445, %v261_v42   ;;  %v269_v18 = vmul.f32 %v261_v42, %v1772_v36  ;;  %v31_v36 = vld [vmem:[%s2492_s1 + $0x70] sm:$0xff]  ;;  %v17_v41 = vld [vmem:[%s2492_s1] sm:$0xff]  ;;  %v30_v40 = vld [vmem:[%s2492_s1 + $0x68] sm:$0xff] }
  0xb4   :  { %v239_v53 = vadd.f32 0.001, %v231_v46  ;;  %v259_v55 = vmul.f32 %v1452_v50, %v22_v43  ;;  %v276_v50 = vsub.f32 %v31_v36, %v268_v35 }
  0xb5   :  { %v238_v57 = vadd.f32 0.001, %v230_v51  ;;  %v277_v26 = vsub.f32 %v32_v20, %v269_v18  ;;  %v27_v18 = vld [vmem:[%s2492_s1 + $0x50] sm:$0xff] }
  0xb6   :  { %1459 = vrsqrt.f32 %v239_v53  ;;  %305 = vperm.xlu1 %1446, %v259_v55   ;;  %v267_v32 = vmul.f32 %v259_v55, %v1774_v39  ;;  %v25_v39 = vld [vmem:[%s2492_s1 + $0x40] sm:$0xff] }
  0xb7   :  { %v1454_v60 = vpop.eup %1453  ;;  %1461 = vrsqrt.f32 %v238_v57 }
  0xb8   :  { %v258_v62 = vmul.f32 %v1454_v60, %v21_v59  ;;  %v275_v53 = vsub.f32 %v30_v40, %v267_v32  ;;  %v29_v60 = vld [vmem:[%s2492_s1 + $0x60] sm:$0xff] }
  0xba   :  { %300 = vperm.xlu1 %1446, %v258_v62   ;;  %v266_v57 = vmul.f32 %v258_v62, %v1782_v54  ;;  %v28_v54 = vld [vmem:[%s2492_s1 + $0x58] sm:$0xff] }
  0xbb   :  { %v1456_v12 = vpop.eup %1455 }
  0xbc   :  { %v257_v13 = vmul.f32 %v1456_v12, %v20_v10  ;;  %v274_v55 = vsub.f32 %v29_v60, %v266_v57 }
  0xbe   :  { %295 = vperm.xlu1 %1446, %v257_v13   ;;  %v265_v12 = vmul.f32 %v257_v13, %v1784_v7  ;;  %v26_v7 = vld [vmem:[%s2492_s1 + $0x48] sm:$0xff] }
  0xbf   :  { %v1458_v21 = vpop.eup %1457 }
  0xc0   :  { %v256_v22 = vmul.f32 %v1458_v21, %v19_v19  ;;  %v1488_v21 = vmov 0.0  }
  0xc1   :  { %531 = vmatprep.mubr.f32.mxu0 %v1488_v21  ;;  %614 = vmatprep.mubr.f32.mxu1 %v1488_v21 }
  0xc2   :  { %290 = vperm.xlu0 %1445, %v256_v22   ;;  %387 = vperm.xlu1 %1446, %v277_v26   ;;  %v264_v62 = vmul.f32 %v256_v22, %v1790_v31 }
  0xc3   :  { %v1460_v42 = vpop.eup %1459 }
  0xc4   :  { %v1462_v43 = vpop.eup %1461  ;;  %v255_v46 = vmul.f32 %v1460_v42, %v18_v38  ;;  %v272_v19 = vsub.f32 %v27_v18, %v264_v62 }
  0xc5   :  { %v254_v51 = vmul.f32 %v1462_v43, %v17_v41 }
  0xc6   :  { %285 = vperm.xlu0 %1445, %v255_v46   ;;  %382 = vperm.xlu1 %1446, %v276_v50   ;;  %v263_v20 = vmul.f32 %v255_v46, %v1794_v47 }
  0xc7   :  { %v262_v59 = vmul.f32 %v254_v51, %v1796_v56  ;;  %v273_v56 = vsub.f32 %v28_v54, %v265_v12 }
  0xc8   :  { %v271_v13 = vsub.f32 %v26_v7, %v263_v20 }
  0xc9   :  { %v270_v10 = vsub.f32 %v25_v39, %v262_v59 }
  0xca   :  { %377 = vperm.xlu1 %1446, %v275_v53   ;;  %280 = vperm.xlu0 %1445, %v254_v51  }
  0xce   :  { %372 = vperm.xlu1 %1446, %v274_v55   ;;  %352 = vperm.xlu0 %1445, %v270_v10  }
  0xd2   :  { %367 = vperm.xlu1 %1446, %v273_v56  }
  0xd6   :  { %362 = vperm.xlu1 %1446, %v272_v19  }
  0xda   :  { %357 = vperm.xlu1 %1446, %v271_v13  }
 0x12d   :  { %v311_v31 = vpop.permute.xlu1 %310 }
 0x12e   :  { %v316_v38 = vpop.permute.xlu0 %315  ;;  %v342_v51 = vmul.f32 %v311_v31, %v1560_v11  ;;  %v343_v53 = vmul.f32 %v311_v31, %v1575_v16  ;;  %v345_v57 = vmul.f32 %v311_v31, %v1612_v29 }
 0x12f   :  { %v347_v47 = vmul.f32 %v316_v38, %v1522_v1  ;;  %v349_v41 = vmul.f32 %v316_v38, %v1548_v8  ;;  %v346_v42 = vmul.f32 %v316_v38, %v1517_v0  ;;  %v348_v43 = vmul.f32 %v316_v38, %v1527_v2 }
 0x130   :  { %v344_v0 = vmul.f32 %v311_v31, %v1580_v17 }
 0x131   :  { %v306_v22 = vpop.permute.xlu1 %305 }
 0x132   :  { %v338_v11 = vmul.f32 %v306_v22, %v1534_v4  ;;  %v339_v16 = vmul.f32 %v306_v22, %v1539_v5  ;;  %v341_v54 = vmul.f32 %v306_v22, %v1570_v15  ;;  %v340_v17 = vmul.f32 %v306_v22, %v1553_v9 }
 0x135   :  { %v301_v26 = vpop.permute.xlu1 %300 }
 0x136   :  { %v334_v5 = vmul.f32 %v301_v26, %v1592_v23  ;;  %v335_v38 = vmul.f32 %v301_v26, %v1597_v24  ;;  %v337_v15 = vmul.f32 %v301_v26, %v1635_v37 }
 0x139   :  { %v1860_v35 = vpop.permute.xlu1 %295 }
 0x13a   :  { %v330_v23 = vmul.f32 %v1860_v35, %v1623_v33  ;;  %v331_v24 = vmul.f32 %v1860_v35, %v1628_v34 }
 0x13d   :  { %v388_v36 = vpop.permute.xlu1 %387  ;;  %v1869_v59 = vpop.permute.xlu0 %290 }
 0x13e   :  { %v419_v46 = vadd.f32 %v388_v36, %v347_v47  ;;  %v421_v50 = vadd.f32 %v388_v36, %v349_v41  ;;  %v418_v32 = vadd.f32 %v388_v36, %v346_v42  ;;  %v420_v40 = vadd.f32 %v388_v36, %v348_v43 }
 0x13f   :  { %v336_v47 = vmul.f32 %v301_v26, %v1602_v25  ;;  %v333_v25 = vmul.f32 %v1860_v35, %v1682_v63  ;;  %v326_v33 = vmul.f32 %v1869_v59, %v1645_v44  ;;  %v327_v34 = vmul.f32 %v1869_v59, %v1650_v45 }
 0x140   :  { %v451_v1 = vmax.f32 %v419_v46, 0.0  ;;  %v453_v39 = vmax.f32 %v421_v50, 0.0  ;;  %v450_v8 = vmax.f32 %v418_v32, 0.0  ;;  %v452_v55 = vmax.f32 %v420_v40, 0.0 }
 0x141   :  { %v383_v60 = vpop.permute.xlu1 %382  ;;  %v1876_v20 = vpop.permute.xlu0 %285 }
 0x142   :  { %483 = vmatprep.subr.mxu0 %v451_v1  ;;  %566 = vmatprep.subr.mxu1 %v453_v39  ;;  %v415_v2 = vadd.f32 %v383_v60, %v343_v53  ;;  %v417_v10 = vadd.f32 %v383_v60, %v345_v57  ;;  %v414_v12 = vadd.f32 %v383_v60, %v342_v51 }
 0x143   :  { %484 = vmatpush1.msra.mxu0 %v450_v8  ;;  %567 = vmatpush1.msra.mxu1 %v452_v55  ;;  %v416_v29 = vadd.f32 %v383_v60, %v344_v0  ;;  %v332_v57 = vmul.f32 %v1860_v35, %v1663_v52  ;;  %v328_v55 = vmul.f32 %v1869_v59, %v1672_v58 }
 0x144   :  { %v447_v62 = vmax.f32 %v415_v2, 0.0  ;;  %v449_v18 = vmax.f32 %v417_v10, 0.0  ;;  %v446_v19 = vmax.f32 %v414_v12, 0.0  ;;  %v329_v0 = vmul.f32 %v1869_v59, %v1700_v14 }
 0x145   :  { %v378_v56 = vpop.permute.xlu1 %377  ;;  %v448_v7 = vmax.f32 %v416_v29, 0.0  ;;  %v281_v26 = vpop.permute.xlu0 %280  ;;  %v322_v44 = vmul.f32 %v1876_v20, %v1687_v3  ;;  %v323_v10 = vmul.f32 %v1876_v20, %v1692_v6  ;;  %v325_v6 = vmul.f32 %v1876_v20, %v1745_v48 }
 0x146   :  { %485 = vmatprep.subr.mxu0 %v447_v62  ;;  %568 = vmatprep.subr.mxu1 %v449_v18  ;;  %v411_v13 = vadd.f32 %v378_v56, %v339_v16  ;;  %v413_v4 = vadd.f32 %v378_v56, %v341_v54  ;;  %v410_v31 = vadd.f32 %v378_v56, %v338_v11 }
 0x147   :  { %486 = vmatpush1.msra.mxu0 %v446_v19  ;;  %v412_v36 = vadd.f32 %v378_v56, %v340_v17  ;;  %569 = vmatpush1.msra.mxu1 %v448_v7  ;;  %v319_v12 = vmul.f32 %v281_v26, %v1724_v30  ;;  %v321_v11 = vmul.f32 %v281_v26, %v1763_v61 }
 0x148   :  { %v443_v22 = vmax.f32 %v411_v13, 0.0  ;;  %v445_v41 = vmax.f32 %v413_v4, 0.0  ;;  %v442_v42 = vmax.f32 %v410_v31, 0.0  ;;  %v318_v3 = vmul.f32 %v281_v26, %v1719_v28 }
 0x149   :  { %v373_v9 = vpop.permute.xlu1 %372  ;;  %v444_v43 = vmax.f32 %v412_v36, 0.0  ;;  %v353_v29 = vpop.permute.xlu0 %352  ;;  %v320_v56 = vmul.f32 %v281_v26, %v1750_v49  ;;  %v324_v19 = vmul.f32 %v1876_v20, %v1714_v27 }
 0x14a   :  { %v407_v46 = vadd.f32 %v373_v9, %v335_v38  ;;  %v409_v50 = vadd.f32 %v373_v9, %v337_v15  ;;  %v406_v32 = vadd.f32 %v373_v9, %v334_v5  ;;  %487 = vmatprep.subr.mxu0 %v443_v22  ;;  %570 = vmatprep.subr.mxu1 %v445_v41 }
 0x14b   :  { %v408_v37 = vadd.f32 %v373_v9, %v336_v47  ;;  %488 = vmatpush1.msra.mxu0 %v442_v42  ;;  %571 = vmatpush1.msra.mxu1 %v444_v43  ;;  %v391_v13 = vadd.f32 %v353_v29, %v319_v12  ;;  %v393_v4 = vadd.f32 %v353_v29, %v321_v11  ;;  %v454_v42 = vld [vmem:[%s2493_s2] sm:$0xff]  ;;  %v455_v43 = vld [vmem:[%s2493_s2 + $0x8] sm:$0xff] }
 0x14c   :  { %v439_v40 = vmax.f32 %v407_v46, 0.0  ;;  %v441_v51 = vmax.f32 %v409_v50, 0.0  ;;  %v438_v53 = vmax.f32 %v406_v32, 0.0  ;;  %v390_v38 = vadd.f32 %v353_v29, %v318_v3  ;;  %v456_v46 = vld [vmem:[%s2493_s2 + $0x10] sm:$0xff] }
 0x14d   :  { %v368_v60 = vpop.permute.xlu1 %367  ;;  %v440_v1 = vmax.f32 %v408_v37, 0.0  ;;  %v392_v48 = vadd.f32 %v353_v29, %v320_v56  ;;  %v423_v27 = vmax.f32 %v391_v13, 0.0  ;;  %v425_v20 = vmax.f32 %v393_v4, 0.0 }
 0x14e   :  { %489 = vmatprep.subr.mxu0 %v439_v40  ;;  %572 = vmatprep.subr.mxu1 %v441_v51  ;;  %v403_v63 = vadd.f32 %v368_v60, %v331_v24  ;;  %v405_v39 = vadd.f32 %v368_v60, %v333_v25  ;;  %v402_v8 = vadd.f32 %v368_v60, %v330_v23  ;;  %v422_v22 = vmax.f32 %v390_v38, 0.0 }
 0x14f   :  { %490 = vmatpush1.msra.mxu0 %v438_v53  ;;  %573 = vmatpush1.msra.mxu1 %v440_v1  ;;  %v404_v52 = vadd.f32 %v368_v60, %v332_v57  ;;  %v424_v41 = vmax.f32 %v392_v48, 0.0 }
 0x150   :  { %v435_v45 = vmax.f32 %v403_v63, 0.0  ;;  %v437_v35 = vmax.f32 %v405_v39, 0.0  ;;  %v434_v2 = vmax.f32 %v402_v8, 0.0 }
 0x151   :  { %v363_v58 = vpop.permute.xlu1 %362  ;;  %v436_v16 = vmax.f32 %v404_v52, 0.0 }
 0x152   :  { %491 = vmatprep.subr.mxu0 %v435_v45  ;;  %574 = vmatprep.subr.mxu1 %v437_v35  ;;  %v399_v14 = vadd.f32 %v363_v58, %v327_v34  ;;  %v401_v59 = vadd.f32 %v363_v58, %v329_v0  ;;  %v398_v54 = vadd.f32 %v363_v58, %v326_v33 }
 0x153   :  { %492 = vmatpush1.msra.mxu0 %v434_v2  ;;  %575 = vmatpush1.msra.mxu1 %v436_v16  ;;  %v400_v62 = vadd.f32 %v363_v58, %v328_v55 }
 0x154   :  { %v431_v30 = vmax.f32 %v399_v14, 0.0  ;;  %v433_v61 = vmax.f32 %v401_v59, 0.0  ;;  %v430_v18 = vmax.f32 %v398_v54, 0.0 }
 0x155   :  { %v358_v17 = vpop.permute.xlu1 %357  ;;  %v432_v7 = vmax.f32 %v400_v62, 0.0 }
 0x156   :  { %493 = vmatprep.subr.mxu0 %v431_v30  ;;  %576 = vmatprep.subr.mxu1 %v433_v61  ;;  %v395_v28 = vadd.f32 %v358_v17, %v323_v10  ;;  %v397_v49 = vadd.f32 %v358_v17, %v325_v6  ;;  %v394_v31 = vadd.f32 %v358_v17, %v322_v44 }
 0x157   :  { %494 = vmatpush1.msra.mxu0 %v430_v18  ;;  %577 = vmatpush1.msra.mxu1 %v432_v7  ;;  %v396_v5 = vadd.f32 %v358_v17, %v324_v19 }
 0x158   :  { %v427_v15 = vmax.f32 %v395_v28, 0.0  ;;  %v429_v36 = vmax.f32 %v397_v49, 0.0  ;;  %v426_v47 = vmax.f32 %v394_v31, 0.0 }
 0x159   :  { %v428_v9 = vmax.f32 %v396_v5, 0.0 }
 0x15a   :  { %495 = vmatprep.subr.mxu0 %v427_v15  ;;  %578 = vmatprep.subr.mxu1 %v429_v36 }
 0x15b   :  { %496 = vmatpush1.msra.mxu0 %v426_v47  ;;  %579 = vmatpush1.msra.mxu1 %v428_v9 }
 0x15c   :  { %497 = vmatprep.subr.mxu0 %v423_v27  ;;  %580 = vmatprep.subr.mxu1 %v425_v20 }
 0x15d   :  { %498 = vmatpush1.msra.mxu0 %v422_v22  ;;  %581 = vmatpush1.msra.mxu1 %v424_v41 }
 0x15e   :  { %1419 = vmatmul.mubr.msk.f32.vlgmr.msra.gmra.mxu0 %vm457_vm0, %v454_v42  ;;  %1422 = vmatmul.mubr.msk.f32.vlgmr.msra.gmra.mxu1 %vm457_vm0, %v454_v42 }
 0x15f   :  { %537 = vmatprep.mubr.f32.mxu0 %v1488_v21  ;;  %620 = vmatprep.mubr.f32.mxu1 %v1488_v21 }
 0x162   :  { %1420 = vmatmul.mubr.msk.f32.gmra.mxu0 %vm457_vm0, %v455_v43  ;;  %1423 = vmatmul.mubr.msk.f32.gmra.mxu1 %vm457_vm0, %v455_v43 }
 0x163   :  { %543 = vmatprep.mubr.f32.mxu0 %v1488_v21  ;;  %626 = vmatprep.mubr.f32.mxu1 %v1488_v21 }
 0x166   :  { %1421 = vmatmul.mubr.msk.f32.gmra.mxu0 %vm457_vm0, %v456_v46  ;;  %1424 = vmatmul.mubr.msk.f32.gmra.mxu1 %vm457_vm0, %v456_v46 }
 0x167   :  { %827 = vmatprep.mubr.f32.mxu0 %v1488_v21  ;;  %946 = vmatprep.mubr.f32.mxu1 %v1488_v21 }
 0x21e   :  { %v1931_v50 = vpop.f32.mrf.mxu0  ;;  %v1933_v32 = vpop.f32.mrf.mxu1 }
 0x21f   :  { %v651_v45 = vmul.f32 %v1931_v50, %v1931_v50  ;;  %v653_v58 = vmul.f32 %v1933_v32, %v1933_v32 }
 0x220   :  { %v1935_v23 = vpop.f32.mrf.mxu0  ;;  %v1937_v24 = vpop.f32.mrf.mxu1 }
 0x221   :  { %v633_v60 = vadd.f32 %v1935_v23, %v1931_v50  ;;  %v652_v1 = vmul.f32 %v1935_v23, %v1935_v23  ;;  %v654_v18 = vmul.f32 %v1937_v24, %v1937_v24 }
 0x222   :  { %v1939_v37 = vpop.f32.mrf.mxu0  ;;  %v1941_v25 = vpop.f32.mrf.mxu1 }
 0x223   :  { %v655_v63 = vmul.f32 %v1939_v37, %v1939_v37  ;;  %v657_v2 = vmul.f32 %v1941_v25, %v1941_v25  ;;  %v634_v16 = vadd.f32 %v633_v60, %v1933_v32  ;;  %v663_v54 = vadd.f32 %v652_v1, %v651_v45  ;;  %v35_v60 = vld [vmem:[%s2492_s1 + $0x90] sm:$0xff] }
 0x224   :  { %v1943_v26 = vpop.f32.mrf.mxu0  ;;  %v1945_v40 = vpop.f32.mrf.mxu1 }
 0x225   :  { %v638_v51 = vadd.f32 %v1943_v26, %v1939_v37  ;;  %v656_v33 = vmul.f32 %v1943_v26, %v1943_v26  ;;  %v635_v62 = vadd.f32 %v634_v16, %v1937_v24  ;;  %v658_v6 = vmul.f32 %v1945_v40, %v1945_v40 }
 0x226   :  { %v1949_v53 = vpop.f32.mrf.mxu0  ;;  %v1951_v57 = vpop.f32.mrf.mxu1  ;;  %v664_v30 = vadd.f32 %v663_v54, %v653_v58 }
 0x227   :  { %v639_v34 = vadd.f32 %v638_v51, %v1941_v25  ;;  %v659_v39 = vmul.f32 %v1949_v53, %v1949_v53  ;;  %v661_v52 = vmul.f32 %v1951_v57, %v1951_v57  ;;  %v668_v11 = vadd.f32 %v656_v33, %v655_v63 }
 0x228   :  { %v1964_v8 = vpop.f32.mrf.mxu0  ;;  %v1975_v35 = vpop.f32.mrf.mxu1  ;;  %v665_v19 = vadd.f32 %v664_v30, %v654_v18 }
 0x229   :  { %v643_v55 = vadd.f32 %v1964_v8, %v1949_v53  ;;  %v660_v0 = vmul.f32 %v1964_v8, %v1964_v8  ;;  %v640_v44 = vadd.f32 %v639_v34, %v1945_v40  ;;  %v662_v14 = vmul.f32 %v1975_v35, %v1975_v35 }
 0x22a   :  { %v669_v56 = vadd.f32 %v668_v11, %v657_v2 }
 0x22b   :  { %641 = vadd.xlane.f32.xlu0 %v640_v44  ;;  %v644_v10 = vadd.f32 %v643_v55, %v1951_v57  ;;  %v673_v12 = vadd.f32 %v660_v0, %v659_v39  ;;  %v34_v39 = vld [vmem:[%s2492_s1 + $0x88] sm:$0xff]  ;;  %v33_v44 = vld [vmem:[%s2492_s1 + $0x80] sm:$0xff] }
 0x22c   :  { %v670_v61 = vadd.f32 %v669_v56, %v658_v6  ;;  %v734_v56 = vld [vmem:[%s2494_s3 + $0x40] sm:$0xff] }
 0x22d   :  { %v645_v29 = vadd.f32 %v644_v10, %v1975_v35  ;;  %v674_v59 = vadd.f32 %v673_v12, %v661_v52 }
 0x22f   :  { %646 = vadd.xlane.f32.xlu1 %v645_v29  ;;  %v675_v3 = vadd.f32 %v674_v59, %v662_v14 }
 0x231   :  { %676 = vadd.xlane.f32.xlu0 %v675_v3 }
 0x233   :  { %636 = vadd.xlane.f32.xlu1 %v635_v62 }
 0x235   :  { %671 = vadd.xlane.f32.xlu0 %v670_v61 }
 0x237   :  { %666 = vadd.xlane.f32.xlu1 %v665_v19 }
 0x2b4   :  { %v642_v17 = vpop.xlane.xlu0 %641 }
 0x2b5   :  { %v649_v28 = vmul.f32 0.001953125, %v642_v17 }
 0x2b7   :  { %v682_v36 = vmul.f32 %v649_v28, %v649_v28 }
 0x2b8   :  { %v647_v7 = vpop.xlane.xlu1 %646 }
 0x2b9   :  { %v650_v13 = vmul.f32 0.001953125, %v647_v7 }
 0x2ba   :  { %v677_v4 = vpop.xlane.xlu0 %676 }
 0x2bb   :  { %v683_v49 = vmul.f32 %v650_v13, %v650_v13  ;;  %v680_v31 = vmul.f32 0.001953125, %v677_v4 }
 0x2bc   :  { %v637_v5 = vpop.xlane.xlu1 %636 }
 0x2bd   :  { %v686_v38 = vsub.f32 %v680_v31, %v683_v49  ;;  %v648_v48 = vmul.f32 0.001953125, %v637_v5 }
 0x2be   :  { %v672_v15 = vpop.xlane.xlu0 %671 }
 0x2bf   :  { %v689_v47 = vmax.f32 %v686_v38, 0.0  ;;  %v679_v9 = vmul.f32 0.001953125, %v672_v15  ;;  %v681_v22 = vmul.f32 %v648_v48, %v648_v48 }
 0x2c0   :  { %v667_v27 = vpop.xlane.xlu1 %666 }
 0x2c1   :  { %v692_v20 = vadd.f32 0.001, %v689_v47  ;;  %v685_v41 = vsub.f32 %v679_v9, %v682_v36  ;;  %v678_v42 = vmul.f32 0.001953125, %v667_v27 }
 0x2c3   :  { %1463 = vrsqrt.f32 %v692_v20  ;;  %v688_v43 = vmax.f32 %v685_v41, 0.0  ;;  %v684_v46 = vsub.f32 %v678_v42, %v681_v22 }
 0x2c5   :  { %v691_v51 = vadd.f32 0.001, %v688_v43  ;;  %v687_v33 = vmax.f32 %v684_v46, 0.0 }
 0x2c7   :  { %1465 = vrsqrt.f32 %v691_v51  ;;  %v690_v34 = vadd.f32 0.001, %v687_v33 }
 0x2c9   :  { %1467 = vrsqrt.f32 %v690_v34 }
 0x2d0   :  { %v1464_v1 = vpop.eup %1463 }
 0x2d1   :  { %v698_v63 = vmul.f32 %v1464_v1, %v35_v60 }
 0x2d3   :  { %711 = vperm.xlu0 %1445, %v698_v63  }
 0x2d4   :  { %v1466_v55 = vpop.eup %1465 }
 0x2d5   :  { %v697_v0 = vmul.f32 %v1466_v55, %v34_v39 }
 0x2d6   :  { %v1468_v52 = vpop.eup %1467 }
 0x2d7   :  { %706 = vperm.xlu1 %1446, %v697_v0   ;;  %v696_v45 = vmul.f32 %v1468_v52, %v33_v44 }
 0x2db   :  { %701 = vperm.xlu1 %1446, %v696_v45  }
 0x34e   :  { %v712_v2 = vpop.permute.xlu0 %711 }
 0x34f   :  { %v722_v10 = vmul.f32 %v712_v2, %v1949_v53  ;;  %v724_v12 = vmul.f32 %v712_v2, %v1951_v57  ;;  %v723_v11 = vmul.f32 %v712_v2, %v1964_v8  ;;  %v725_v58 = vmul.f32 %v712_v2, %v1975_v35 }
 0x351   :  { %789 = vmatprep.subr.mxu0 %v723_v11  ;;  %908 = vmatprep.subr.mxu1 %v725_v58 }
 0x352   :  { %790 = vmatpush1.msra.mxu0 %v722_v10  ;;  %909 = vmatpush1.msra.mxu1 %v724_v12  ;;  %v707_v16 = vpop.permute.xlu1 %706 }
 0x353   :  { %v718_v29 = vmul.f32 %v707_v16, %v1939_v37  ;;  %v720_v14 = vmul.f32 %v707_v16, %v1941_v25  ;;  %v719_v59 = vmul.f32 %v707_v16, %v1943_v26  ;;  %v721_v54 = vmul.f32 %v707_v16, %v1945_v40  ;;  %v726_v37 = vld [vmem:[%s2494_s3] sm:$0xff]  ;;  %v731_v25 = vld [vmem:[%s2494_s3 + $0x28] sm:$0xff]  ;;  %v732_v26 = vld [vmem:[%s2494_s3 + $0x30] sm:$0xff] }
 0x354   :  { %v733_v40 = vld [vmem:[%s2494_s3 + $0x38] sm:$0xff] }
 0x355   :  { %791 = vmatprep.subr.mxu0 %v719_v59  ;;  %910 = vmatprep.subr.mxu1 %v721_v54 }
 0x356   :  { %792 = vmatpush1.msra.mxu0 %v718_v29  ;;  %911 = vmatpush1.msra.mxu1 %v720_v14  ;;  %v702_v53 = vpop.permute.xlu1 %701 }
 0x357   :  { %v714_v57 = vmul.f32 %v702_v53, %v1931_v50  ;;  %v716_v8 = vmul.f32 %v702_v53, %v1933_v32  ;;  %v715_v35 = vmul.f32 %v702_v53, %v1935_v23  ;;  %v717_v3 = vmul.f32 %v702_v53, %v1937_v24  ;;  %v727_v50 = vld [vmem:[%s2494_s3 + $0x8] sm:$0xff]  ;;  %v728_v32 = vld [vmem:[%s2494_s3 + $0x10] sm:$0xff]  ;;  %v729_v23 = vld [vmem:[%s2494_s3 + $0x18] sm:$0xff] }
 0x358   :  { %v730_v24 = vld [vmem:[%s2494_s3 + $0x20] sm:$0xff] }
 0x359   :  { %793 = vmatprep.subr.mxu0 %v715_v35  ;;  %912 = vmatprep.subr.mxu1 %v717_v3 }
 0x35a   :  { %794 = vmatpush1.msra.mxu0 %v714_v57  ;;  %913 = vmatpush1.msra.mxu1 %v716_v8 }
 0x35b   :  { %1425 = vmatmul.mubr.msk.f32.vlgmr.msra.gmra.mxu0 %vm735_vm1, %v726_v37  ;;  %1434 = vmatmul.mubr.msk.f32.vlgmr.msra.gmra.mxu1 %vm735_vm1, %v726_v37 }
 0x35c   :  { %833 = vmatprep.mubr.f32.mxu0 %v1488_v21  ;;  %952 = vmatprep.mubr.f32.mxu1 %v1488_v21 }
 0x35f   :  { %1426 = vmatmul.mubr.msk.f32.gmra.mxu0 %vm735_vm1, %v727_v50  ;;  %1435 = vmatmul.mubr.msk.f32.gmra.mxu1 %vm735_vm1, %v727_v50 }
 0x360   :  { %839 = vmatprep.mubr.f32.mxu0 %v1488_v21  ;;  %958 = vmatprep.mubr.f32.mxu1 %v1488_v21 }
 0x363   :  { %1427 = vmatmul.mubr.msk.f32.gmra.mxu0 %vm735_vm1, %v728_v32  ;;  %1436 = vmatmul.mubr.msk.f32.gmra.mxu1 %vm735_vm1, %v728_v32 }
 0x364   :  { %845 = vmatprep.mubr.f32.mxu0 %v1488_v21  ;;  %964 = vmatprep.mubr.f32.mxu1 %v1488_v21 }
 0x367   :  { %1428 = vmatmul.mubr.msk.f32.gmra.mxu0 %vm735_vm1, %v729_v23  ;;  %1437 = vmatmul.mubr.msk.f32.gmra.mxu1 %vm735_vm1, %v729_v23 }
 0x368   :  { %851 = vmatprep.mubr.f32.mxu0 %v1488_v21  ;;  %970 = vmatprep.mubr.f32.mxu1 %v1488_v21 }
 0x36b   :  { %1429 = vmatmul.mubr.msk.f32.gmra.mxu0 %vm735_vm1, %v730_v24  ;;  %1438 = vmatmul.mubr.msk.f32.gmra.mxu1 %vm735_vm1, %v730_v24 }
 0x36c   :  { %857 = vmatprep.mubr.f32.mxu0 %v1488_v21  ;;  %976 = vmatprep.mubr.f32.mxu1 %v1488_v21 }
 0x36f   :  { %1430 = vmatmul.mubr.msk.f32.gmra.mxu0 %vm735_vm1, %v731_v25  ;;  %1439 = vmatmul.mubr.msk.f32.gmra.mxu1 %vm735_vm1, %v731_v25 }
 0x370   :  { %863 = vmatprep.mubr.f32.mxu0 %v1488_v21  ;;  %982 = vmatprep.mubr.f32.mxu1 %v1488_v21 }
 0x373   :  { %1431 = vmatmul.mubr.msk.f32.gmra.mxu0 %vm735_vm1, %v732_v26  ;;  %1440 = vmatmul.mubr.msk.f32.gmra.mxu1 %vm735_vm1, %v732_v26 }
 0x374   :  { %869 = vmatprep.mubr.f32.mxu0 %v1488_v21  ;;  %988 = vmatprep.mubr.f32.mxu1 %v1488_v21 }
 0x377   :  { %1432 = vmatmul.mubr.msk.f32.gmra.mxu0 %vm735_vm1, %v733_v40  ;;  %1441 = vmatmul.mubr.msk.f32.gmra.mxu1 %vm735_vm1, %v733_v40 }
 0x378   :  { %875 = vmatprep.mubr.f32.mxu0 %v1488_v21  ;;  %994 = vmatprep.mubr.f32.mxu1 %v1488_v21 }
 0x37b   :  { %1433 = vmatmul.mubr.msk.f32.gmra.mxu0 %vm735_vm1, %v734_v56  ;;  %1442 = vmatmul.mubr.msk.f32.gmra.mxu1 %vm735_vm1, %v734_v56 }
 0x41b   :  { %v2073_v62 = vpop.f32.mrf.mxu0  ;;  %v2075_v6 = vpop.f32.mrf.mxu1 }
 0x41c   :  { %v1055_v18 = vmul.f32 %v2073_v62, %v2073_v62  ;;  %v1057_v17 = vmul.f32 %v2075_v6, %v2075_v6 }
 0x41d   :  { %v2077_v30 = vpop.f32.mrf.mxu0  ;;  %v2079_v61 = vpop.f32.mrf.mxu1 }
 0x41e   :  { %v1001_v19 = vadd.f32 %v2077_v30, %v2073_v62  ;;  %v1056_v21 = vmul.f32 %v2077_v30, %v2077_v30  ;;  %v1058_v20 = vmul.f32 %v2079_v61, %v2079_v61 }
 0x41f   :  { %v2089_v7 = vpop.f32.mrf.mxu0  ;;  %v2091_v13 = vpop.f32.mrf.mxu1 }
 0x420   :  { %v1002_v4 = vadd.f32 %v1001_v19, %v2075_v6  ;;  %v1091_v28 = vadd.f32 %v1056_v21, %v1055_v18  ;;  %v1059_v36 = vmul.f32 %v2089_v7, %v2089_v7  ;;  %v1061_v9 = vmul.f32 %v2091_v13, %v2091_v13 }
 0x421   :  { %v2094_v49 = vpop.f32.mrf.mxu0  ;;  %v2096_v31 = vpop.f32.mrf.mxu1 }
 0x422   :  { %v1006_v5 = vadd.f32 %v2094_v49, %v2089_v7  ;;  %v1060_v38 = vmul.f32 %v2094_v49, %v2094_v49  ;;  %v1003_v48 = vadd.f32 %v1002_v4, %v2079_v61  ;;  %v1092_v15 = vadd.f32 %v1091_v28, %v1057_v17 }
 0x423   :  { %v2105_v47 = vpop.f32.mrf.mxu0  ;;  %v2109_v27 = vpop.f32.mrf.mxu1  ;;  %v1062_v0 = vmul.f32 %v2096_v31, %v2096_v31 }
 0x424   :  { %1004 = vadd.xlane.f32.xlu0 %v1003_v48  ;;  %v1007_v22 = vadd.f32 %v1006_v5, %v2091_v13  ;;  %v1096_v43 = vadd.f32 %v1060_v38, %v1059_v36  ;;  %v1093_v33 = vadd.f32 %v1092_v15, %v1058_v20  ;;  %v1063_v60 = vmul.f32 %v2105_v47, %v2105_v47 }
 0x425   :  { %v2114_v41 = vpop.f32.mrf.mxu0  ;;  %v2116_v42 = vpop.f32.mrf.mxu1  ;;  %v1065_v63 = vmul.f32 %v2109_v27, %v2109_v27 }
 0x426   :  { %v1011_v46 = vadd.f32 %v2114_v41, %v2105_v47  ;;  %v1064_v51 = vmul.f32 %v2114_v41, %v2114_v41  ;;  %v1008_v34 = vadd.f32 %v1007_v22, %v2096_v31  ;;  %v1097_v55 = vadd.f32 %v1096_v43, %v1061_v9 }
 0x427   :  { %v2125_v1 = vpop.f32.mrf.mxu0  ;;  %v2129_v39 = vpop.f32.mrf.mxu1  ;;  %v1066_v53 = vmul.f32 %v2116_v42, %v2116_v42 }
 0x428   :  { %1094 = vadd.xlane.f32.xlu0 %v1093_v33  ;;  %1009 = vadd.xlane.f32.xlu1 %v1008_v34  ;;  %v1012_v52 = vadd.f32 %v1011_v46, %v2109_v27  ;;  %v1067_v44 = vmul.f32 %v2125_v1, %v2125_v1  ;;  %v1069_v2 = vmul.f32 %v2129_v39, %v2129_v39 }
 0x429   :  { %v2136_v45 = vpop.f32.mrf.mxu0  ;;  %v2140_v10 = vpop.f32.mrf.mxu1  ;;  %v1101_v12 = vadd.f32 %v1064_v51, %v1063_v60  ;;  %v1098_v16 = vadd.f32 %v1097_v55, %v1062_v0 }
 0x42a   :  { %v1016_v11 = vadd.f32 %v2136_v45, %v2125_v1  ;;  %v1068_v58 = vmul.f32 %v2136_v45, %v2136_v45  ;;  %v1013_v29 = vadd.f32 %v1012_v52, %v2116_v42  ;;  %v1070_v3 = vmul.f32 %v2140_v10, %v2140_v10 }
 0x42b   :  { %v2147_v14 = vpop.f32.mrf.mxu0  ;;  %v2149_v59 = vpop.f32.mrf.mxu1  ;;  %v1102_v54 = vadd.f32 %v1101_v12, %v1065_v63 }
 0x42c   :  { %1099 = vadd.xlane.f32.xlu1 %v1098_v16  ;;  %1014 = vadd.xlane.f32.xlu0 %v1013_v29  ;;  %v1106_v57 = vadd.f32 %v1068_v58, %v1067_v44  ;;  %v1017_v37 = vadd.f32 %v1016_v11, %v2129_v39  ;;  %v1071_v25 = vmul.f32 %v2147_v14, %v2147_v14 }
 0x42d   :  { %v2153_v8 = vpop.f32.mrf.mxu0  ;;  %v2155_v35 = vpop.f32.mrf.mxu1  ;;  %v1103_v23 = vadd.f32 %v1102_v54, %v1066_v53  ;;  %v1073_v40 = vmul.f32 %v2149_v59, %v2149_v59 }
 0x42e   :  { %v1021_v50 = vadd.f32 %v2153_v8, %v2147_v14  ;;  %v1072_v32 = vmul.f32 %v2153_v8, %v2153_v8  ;;  %v1107_v24 = vadd.f32 %v1106_v57, %v1069_v2  ;;  %v1018_v17 = vadd.f32 %v1017_v37, %v2140_v10 }
 0x42f   :  { %v2166_v26 = vpop.f32.mrf.mxu0  ;;  %v2170_v56 = vpop.f32.mrf.mxu1  ;;  %v1074_v43 = vmul.f32 %v2155_v35, %v2155_v35 }
 0x430   :  { %1104 = vadd.xlane.f32.xlu0 %v1103_v23  ;;  %v1108_v18 = vadd.f32 %v1107_v24, %v1070_v3  ;;  %v1022_v19 = vadd.f32 %v1021_v50, %v2149_v59  ;;  %v1111_v28 = vadd.f32 %v1072_v32, %v1071_v25  ;;  %v1075_v5 = vmul.f32 %v2166_v26, %v2166_v26 }
 0x431   :  { %v2173_v21 = vpop.f32.mrf.mxu0  ;;  %v2176_v4 = vpop.f32.mrf.mxu1  ;;  %v1077_v15 = vmul.f32 %v2170_v56, %v2170_v56 }
 0x432   :  { %v1026_v38 = vadd.f32 %v2173_v21, %v2166_v26  ;;  %v1076_v48 = vmul.f32 %v2173_v21, %v2173_v21  ;;  %1109 = vadd.xlane.f32.xlu1 %v1108_v18  ;;  %v1112_v20 = vadd.f32 %v1111_v28, %v1073_v40  ;;  %v1023_v22 = vadd.f32 %v1022_v19, %v2155_v35 }
 0x433   :  { %v2186_v36 = vpop.f32.mrf.mxu0  ;;  %v2188_v9 = vpop.f32.mrf.mxu1  ;;  %v1078_v34 = vmul.f32 %v2176_v4, %v2176_v4 }
 0x434   :  { %1019 = vadd.xlane.f32.xlu0 %v1018_v17  ;;  %v1116_v46 = vadd.f32 %v1076_v48, %v1075_v5  ;;  %v1027_v60 = vadd.f32 %v1026_v38, %v2170_v56  ;;  %v1113_v0 = vadd.f32 %v1112_v20, %v1074_v43  ;;  %v1079_v44 = vmul.f32 %v2186_v36, %v2186_v36 }
 0x435   :  { %v2193_v51 = vpop.f32.mrf.mxu0  ;;  %v2195_v33 = vpop.f32.mrf.mxu1  ;;  %v1081_v12 = vmul.f32 %v2188_v9, %v2188_v9 }
 0x436   :  { %v1031_v63 = vadd.f32 %v2193_v51, %v2186_v36  ;;  %v1080_v55 = vmul.f32 %v2193_v51, %v2193_v51  ;;  %1024 = vadd.xlane.f32.xlu1 %v1023_v22  ;;  %v1117_v52 = vadd.f32 %v1116_v46, %v1077_v15  ;;  %v1028_v37 = vadd.f32 %v1027_v60, %v2176_v4 }
 0x437   :  { %v2206_v2 = vpop.f32.mrf.mxu0  ;;  %v2210_v11 = vpop.f32.mrf.mxu1  ;;  %v1082_v40 = vmul.f32 %v2195_v33, %v2195_v33 }
 0x438   :  { %1114 = vadd.xlane.f32.xlu0 %v1113_v0  ;;  %v1118_v58 = vadd.f32 %v1117_v52, %v1078_v34  ;;  %v1032_v16 = vadd.f32 %v1031_v63, %v2188_v9  ;;  %v1121_v53 = vadd.f32 %v1080_v55, %v1079_v44  ;;  %v1083_v23 = vmul.f32 %v2206_v2, %v2206_v2 }
 0x439   :  { %v2213_v29 = vpop.f32.mrf.mxu0  ;;  %v2215_v54 = vpop.f32.mrf.mxu1  ;;  %v1085_v19 = vmul.f32 %v2210_v11, %v2210_v11 }
 0x43a   :  { %v1036_v57 = vadd.f32 %v2213_v29, %v2206_v2  ;;  %v1084_v3 = vmul.f32 %v2213_v29, %v2213_v29  ;;  %1119 = vadd.xlane.f32.xlu1 %v1118_v58  ;;  %v1122_v32 = vadd.f32 %v1121_v53, %v1081_v12  ;;  %v1033_v24 = vadd.f32 %v1032_v16, %v2195_v33 }
 0x43b   :  { %v2222_v50 = vpop.f32.mrf.mxu0  ;;  %v2227_v25 = vpop.f32.mrf.mxu1  ;;  %v1086_v52 = vmul.f32 %v2215_v54, %v2215_v54 }
 0x43c   :  { %1029 = vadd.xlane.f32.xlu0 %v1028_v37  ;;  %v1087_v18 = vmul.f32 %v2222_v50, %v2222_v50  ;;  %v1089_v28 = vmul.f32 %v2227_v25, %v2227_v25  ;;  %v1037_v5 = vadd.f32 %v1036_v57, %v2210_v11  ;;  %v1123_v15 = vadd.f32 %v1122_v32, %v1082_v40 }
 0x43d   :  { %v2235_v17 = vpop.f32.mrf.mxu0  ;;  %v1126_v20 = vadd.f32 %v1084_v3, %v1083_v23  ;;  %v2245_v46 = vpop.f32.mrf.mxu1 }
 0x43e   :  { %v1041_v38 = vadd.f32 %v2235_v17, %v2222_v50  ;;  %v1088_v48 = vmul.f32 %v2235_v17, %v2235_v17  ;;  %1034 = vadd.xlane.f32.xlu1 %v1033_v24  ;;  %v1038_v34 = vadd.f32 %v1037_v5, %v2215_v54  ;;  %v1090_v0 = vmul.f32 %v2245_v46, %v2245_v46 }
 0x43f   :  { %v1127_v55 = vadd.f32 %v1126_v20, %v1085_v19 }
 0x440   :  { %v1131_v22 = vadd.f32 %v1088_v48, %v1087_v18  ;;  %1124 = vadd.xlane.f32.xlu0 %v1123_v15  ;;  %v1042_v43 = vadd.f32 %v1041_v38, %v2227_v25 }
 0x441   :  { %v1128_v12 = vadd.f32 %v1127_v55, %v1086_v52 }
 0x442   :  { %v1043_v60 = vadd.f32 %v1042_v43, %v2245_v46  ;;  %v1132_v63 = vadd.f32 %v1131_v22, %v1089_v28 }
 0x444   :  { %1039 = vadd.xlane.f32.xlu0 %v1038_v34  ;;  %1044 = vadd.xlane.f32.xlu1 %v1043_v60  ;;  %v1133_v44 = vadd.f32 %v1132_v63, %v1090_v0 }
 0x448   :  { %1134 = vadd.xlane.f32.xlu0 %v1133_v44  ;;  %1129 = vadd.xlane.f32.xlu1 %v1128_v12 }
 0x4ad   :  { %v1005_v58 = vpop.xlane.xlu0 %1004 }
 0x4ae   :  { %v1046_v16 = vmul.f32 0.001953125, %v1005_v58 }
 0x4b0   :  { %v1145_v3 = vmul.f32 %v1046_v16, %v1046_v16 }
 0x4b1   :  { %v1095_v53 = vpop.xlane.xlu0 %1094  ;;  %v1010_v57 = vpop.xlane.xlu1 %1009 }
 0x4b2   :  { %v1136_v37 = vmul.f32 0.001953125, %v1095_v53  ;;  %v2253_v32 = vmul.f32 0.001953125, %v1010_v57 }
 0x4b4   :  { %v1154_v23 = vsub.f32 %v1136_v37, %v1145_v3  ;;  %v1146_v19 = vmul.f32 %v2253_v32, %v2253_v32 }
 0x4b5   :  { %v1100_v24 = vpop.xlane.xlu1 %1099  ;;  %v1015_v40 = vpop.xlane.xlu0 %1014 }
 0x4b6   :  { %v1163_v18 = vmax.f32 %v1154_v23, 0.0  ;;  %v1137_v28 = vmul.f32 0.001953125, %v1100_v24  ;;  %v2257_v5 = vmul.f32 0.001953125, %v1015_v40 }
 0x4b8   :  { %v1172_v38 = vadd.f32 0.001, %v1163_v18  ;;  %v1155_v48 = vsub.f32 %v1137_v28, %v1146_v19  ;;  %v1147_v22 = vmul.f32 %v2257_v5, %v2257_v5 }
 0x4b9   :  { %v1105_v15 = vpop.xlane.xlu0 %1104 }
 0x4ba   :  { %1469 = vrsqrt.f32 %v1172_v38  ;;  %v1164_v20 = vmax.f32 %v1155_v48, 0.0  ;;  %v1138_v43 = vmul.f32 0.001953125, %v1105_v15 }
 0x4bb   :  { %v1110_v34 = vpop.xlane.xlu1 %1109 }
 0x4bc   :  { %v1173_v60 = vadd.f32 0.001, %v1164_v20  ;;  %v1156_v63 = vsub.f32 %v1138_v43, %v1147_v22  ;;  %v1139_v58 = vmul.f32 0.001953125, %v1110_v34  ;;  %v36_v20 = vld [vmem:[%s2492_s1 + $0x98] sm:$0xff] }
 0x4bd   :  { %v1020_v55 = vpop.xlane.xlu0 %1019 }
 0x4be   :  { %1471 = vrsqrt.f32 %v1173_v60  ;;  %v1165_v0 = vmax.f32 %v1156_v63, 0.0  ;;  %v2261_v52 = vmul.f32 0.001953125, %v1020_v55 }
 0x4bf   :  { %v1025_v44 = vpop.xlane.xlu1 %1024 }
 0x4c0   :  { %v1174_v12 = vadd.f32 0.001, %v1165_v0  ;;  %v1148_v53 = vmul.f32 %v2261_v52, %v2261_v52  ;;  %v2265_v57 = vmul.f32 0.001953125, %v1025_v44 }
 0x4c1   :  { %v1115_v3 = vpop.xlane.xlu0 %1114 }
 0x4c2   :  { %1473 = vrsqrt.f32 %v1174_v12  ;;  %v1157_v37 = vsub.f32 %v1139_v58, %v1148_v53  ;;  %v1149_v23 = vmul.f32 %v2265_v57, %v2265_v57  ;;  %v1140_v24 = vmul.f32 0.001953125, %v1115_v3  ;;  %v37_v12 = vld [vmem:[%s2492_s1 + $0xa0] sm:$0xff] }
 0x4c3   :  { %v1120_v40 = vpop.xlane.xlu1 %1119 }
 0x4c4   :  { %v1166_v18 = vmax.f32 %v1157_v37, 0.0  ;;  %v1158_v19 = vsub.f32 %v1140_v24, %v1149_v23  ;;  %v1141_v43 = vmul.f32 0.001953125, %v1120_v40  ;;  %v45_v37 = vld [vmem:[%s2492_s1 + $0xe0] sm:$0xff] }
 0x4c5   :  { %v1030_v28 = vpop.xlane.xlu0 %1029 }
 0x4c6   :  { %v1175_v38 = vadd.f32 0.001, %v1166_v18  ;;  %v1167_v48 = vmax.f32 %v1158_v19, 0.0  ;;  %v2269_v15 = vmul.f32 0.001953125, %v1030_v28 }
 0x4c7   :  { %v1470_v22 = vpop.eup %1469  ;;  %v1035_v34 = vpop.xlane.xlu1 %1034 }
 0x4c8   :  { %1475 = vrsqrt.f32 %v1175_v38  ;;  %v1176_v60 = vadd.f32 0.001, %v1167_v48  ;;  %v1150_v63 = vmul.f32 %v2269_v15, %v2269_v15  ;;  %v2276_v55 = vmul.f32 0.001953125, %v1035_v34 }
 0x4c9   :  { %v1125_v0 = vpop.xlane.xlu0 %1124  ;;  %v1190_v44 = vmul.f32 %v1470_v22, %v36_v20  ;;  %v46_v20 = vld [vmem:[%s2492_s1 + $0xe8] sm:$0xff] }
 0x4ca   :  { %1477 = vrsqrt.f32 %v1176_v60  ;;  %v1159_v58 = vsub.f32 %v1141_v43, %v1150_v63  ;;  %v1151_v53 = vmul.f32 %v2276_v55, %v2276_v55  ;;  %v1142_v3 = vmul.f32 0.001953125, %v1125_v0 }
 0x4cb   :  { %v1472_v23 = vpop.eup %1471  ;;  %1219 = vperm.xlu1 %1446, %v1190_v44   ;;  %v1199_v24 = vmul.f32 %v1190_v44, %v1046_v16  ;;  %v38_v16 = vld [vmem:[%s2492_s1 + $0xa8] sm:$0xff] }
 0x4cc   :  { %v1168_v40 = vmax.f32 %v1159_v58, 0.0  ;;  %v1160_v18 = vsub.f32 %v1142_v3, %v1151_v53  ;;  %v1191_v19 = vmul.f32 %v1472_v23, %v37_v12 }
 0x4cd   :  { %v1040_v28 = vpop.xlane.xlu0 %1039  ;;  %v1045_v38 = vpop.xlane.xlu1 %1044  ;;  %v1208_v48 = vsub.f32 %v45_v37, %v1199_v24 }
 0x4ce   :  { %v1177_v22 = vadd.f32 0.001, %v1168_v40  ;;  %v1169_v43 = vmax.f32 %v1160_v18, 0.0  ;;  %v2289_v34 = vmul.f32 0.001953125, %v1040_v28  ;;  %v2291_v60 = vmul.f32 0.001953125, %v1045_v38  ;;  %1224 = vperm.xlu0 %1445, %v1191_v19   ;;  %v39_v18 = vld [vmem:[%s2492_s1 + $0xb0] sm:$0xff] }
 0x4cf   :  { %v1474_v63 = vpop.eup %1473  ;;  %1300 = vperm.xlu1 %1446, %v1208_v48   ;;  %v1200_v0 = vmul.f32 %v1191_v19, %v2253_v32  ;;  %v40_v38 = vld [vmem:[%s2492_s1 + $0xb8] sm:$0xff] }
 0x4d0   :  { %1479 = vrsqrt.f32 %v1177_v22  ;;  %v1178_v44 = vadd.f32 0.001, %v1169_v43  ;;  %v1152_v12 = vmul.f32 %v2289_v34, %v2289_v34  ;;  %v1192_v37 = vmul.f32 %v1474_v63, %v38_v16  ;;  %v47_v63 = vld [vmem:[%s2492_s1 + $0xf0] sm:$0xff] }
 0x4d1   :  { %v1135_v58 = vpop.xlane.xlu0 %1134  ;;  %v1130_v53 = vpop.xlane.xlu1 %1129  ;;  %v1209_v3 = vsub.f32 %v46_v20, %v1200_v0  ;;  %v1153_v23 = vmul.f32 %v2291_v60, %v2291_v60 }
 0x4d2   :  { %1481 = vrsqrt.f32 %v1178_v44  ;;  %v1144_v24 = vmul.f32 0.001953125, %v1135_v58  ;;  %v1143_v40 = vmul.f32 0.001953125, %v1130_v53  ;;  %v1201_v43 = vmul.f32 %v1192_v37, %v2257_v5  ;;  %v48_v53 = vld [vmem:[%s2492_s1 + $0xf8] sm:$0xff]  ;;  %v41_v5 = vld [vmem:[%s2492_s1 + $0xc0] sm:$0xff] }
 0x4d3   :  { %1305 = vperm.xlu0 %1445, %v1209_v3   ;;  %1229 = vperm.xlu1 %1446, %v1192_v37  }
 0x4d4   :  { %v1162_v32 = vsub.f32 %v1144_v24, %v1153_v23  ;;  %v1161_v19 = vsub.f32 %v1143_v40, %v1152_v12  ;;  %v1210_v3 = vsub.f32 %v47_v63, %v1201_v43 }
 0x4d5   :  { %v1476_v28 = vpop.eup %1475 }
 0x4d6   :  { %v1193_v48 = vmul.f32 %v1476_v28, %v39_v18  ;;  %v1171_v20 = vmax.f32 %v1162_v32, 0.0  ;;  %v1170_v22 = vmax.f32 %v1161_v19, 0.0  ;;  %v49_v32 = vld [vmem:[%s2492_s1 + $0x100] sm:$0xff] }
 0x4d7   :  { %v1478_v16 = vpop.eup %1477 }
 0x4d8   :  { %v1202_v0 = vmul.f32 %v1193_v48, %v2261_v52  ;;  %v1180_v44 = vadd.f32 0.001, %v1171_v20  ;;  %v1179_v58 = vadd.f32 0.001, %v1170_v22  ;;  %1234 = vperm.xlu1 %1446, %v1193_v48   ;;  %v1194_v12 = vmul.f32 %v1478_v16, %v40_v38  ;;  %v42_v52 = vld [vmem:[%s2492_s1 + $0xc8] sm:$0xff]  ;;  %v43_v22 = vld [vmem:[%s2492_s1 + $0xd0] sm:$0xff] }
 0x4d9   :  { %v50_v38 = vld [vmem:[%s2492_s1 + $0x108] sm:$0xff] }
 0x4da   :  { %1483 = vrsqrt.f32 %v1180_v44  ;;  %1239 = vperm.xlu0 %1445, %v1194_v12   ;;  %v1211_v37 = vsub.f32 %v48_v53, %v1202_v0  ;;  %v1203_v40 = vmul.f32 %v1194_v12, %v2265_v57  ;;  %v44_v57 = vld [vmem:[%s2492_s1 + $0xd8] sm:$0xff]  ;;  %v51_v44 = vld [vmem:[%s2492_s1 + $0x110] sm:$0xff] }
 0x4db   :  { %1485 = vrsqrt.f32 %v1179_v58  ;;  %v52_v58 = vld [vmem:[%s2492_s1 + $0x118] sm:$0xff] }
 0x4dc   :  { %1310 = vperm.xlu1 %1446, %v1210_v3   ;;  %v1212_v48 = vsub.f32 %v49_v32, %v1203_v40 }
 0x4dd   :  { %v1480_v23 = vpop.eup %1479 }
 0x4de   :  { %v1195_v24 = vmul.f32 %v1480_v23, %v41_v5  ;;  %1315 = vperm.xlu0 %1445, %v1211_v37  }
 0x4df   :  { %v1482_v18 = vpop.eup %1481 }
 0x4e0   :  { %v1204_v19 = vmul.f32 %v1195_v24, %v2269_v15  ;;  %1244 = vperm.xlu1 %1446, %v1195_v24   ;;  %v1196_v28 = vmul.f32 %v1482_v18, %v42_v52 }
 0x4e2   :  { %1249 = vperm.xlu0 %1445, %v1196_v28   ;;  %v1213_v20 = vsub.f32 %v50_v38, %v1204_v19  ;;  %v1205_v0 = vmul.f32 %v1196_v28, %v2276_v55  ;;  %v53_v55 = vld [vmem:[%s2492_s1 + $0x120] sm:$0xff] }
 0x4e4   :  { %1320 = vperm.xlu1 %1446, %v1212_v48   ;;  %v1214_v53 = vsub.f32 %v51_v44, %v1205_v0 }
 0x4e6   :  { %1325 = vperm.xlu0 %1445, %v1213_v20  }
 0x4e7   :  { %v1484_v15 = vpop.eup %1483 }
 0x4e8   :  { %v1486_v43 = vpop.eup %1485  ;;  %v1198_v16 = vmul.f32 %v1484_v15, %v44_v57 }
 0x4e9   :  { %v1197_v63 = vmul.f32 %v1486_v43, %v43_v22 }
 0x4ea   :  { %1259 = vperm.xlu0 %1445, %v1198_v16   ;;  %v1207_v5 = vmul.f32 %v1198_v16, %v2291_v60 }
 0x4eb   :  { %1254 = vperm.xlu1 %1446, %v1197_v63   ;;  %v1206_v12 = vmul.f32 %v1197_v63, %v2289_v34 }
 0x4ec   :  { %v1216_v37 = vsub.f32 %v53_v55, %v1207_v5 }
 0x4ed   :  { %v1215_v3 = vsub.f32 %v52_v58, %v1206_v12 }
 0x4ef   :  { %1330 = vperm.xlu1 %1446, %v1214_v53   ;;  %1335 = vperm.xlu0 %1445, %v1215_v3  }
 0x4f3   :  { %1340 = vperm.xlu1 %1446, %v1216_v37  }
 0x546   :  { %v1220_v23 = vpop.permute.xlu1 %1219 }
 0x547   :  { %v1262_v52 = vmul.f32 %v1220_v23, %v2073_v62  ;;  %v1263_v24 = vmul.f32 %v1220_v23, %v2077_v30  ;;  %v1264_v40 = vmul.f32 %v1220_v23, %v2075_v6  ;;  %v1265_v34 = vmul.f32 %v1220_v23, %v2079_v61 }
 0x549   :  { %v1225_v18 = vpop.permute.xlu0 %1224 }
 0x54a   :  { %v1301_v32 = vpop.permute.xlu1 %1300  ;;  %v1266_v48 = vmul.f32 %v1225_v18, %v2089_v7  ;;  %v1267_v20 = vmul.f32 %v1225_v18, %v2094_v49  ;;  %v1268_v57 = vmul.f32 %v1225_v18, %v2091_v13  ;;  %v1269_v62 = vmul.f32 %v1225_v18, %v2096_v31 }
 0x54b   :  { %v1343_v60 = vadd.f32 %v1301_v32, %v1262_v52  ;;  %v1344_v19 = vadd.f32 %v1301_v32, %v1263_v24  ;;  %v1345_v28 = vadd.f32 %v1301_v32, %v1264_v40  ;;  %v1346_v38 = vadd.f32 %v1301_v32, %v1265_v34 }
 0x54d   :  { %1379 = vst [vmem:[%s2495_s4] sm:$0xff] %v1343_v60  ;;  %1380 = vst [vmem:[%s2495_s4 + $0x8] sm:$0xff] %v1344_v19 }
 0x54e   :  { %1381 = vst [vmem:[%s2495_s4 + $0x10] sm:$0xff] %v1345_v28  ;;  %1382 = vst [vmem:[%s2495_s4 + $0x18] sm:$0xff] %v1346_v38  ;;  %v1306_v6 = vpop.permute.xlu0 %1305  ;;  %v1230_v49 = vpop.permute.xlu1 %1229 }
 0x54f   :  { %v1347_v30 = vadd.f32 %v1306_v6, %v1266_v48  ;;  %v1348_v61 = vadd.f32 %v1306_v6, %v1267_v20  ;;  %v1349_v7 = vadd.f32 %v1306_v6, %v1268_v57  ;;  %v1350_v13 = vadd.f32 %v1306_v6, %v1269_v62 }
 0x550   :  { %v1270_v15 = vmul.f32 %v1230_v49, %v2105_v47  ;;  %v1271_v43 = vmul.f32 %v1230_v49, %v2114_v41  ;;  %v1272_v16 = vmul.f32 %v1230_v49, %v2109_v27  ;;  %v1273_v63 = vmul.f32 %v1230_v49, %v2116_v42 }
 0x551   :  { %1383 = vst [vmem:[%s2495_s4 + $0x20] sm:$0xff] %v1347_v30  ;;  %1384 = vst [vmem:[%s2495_s4 + $0x28] sm:$0xff] %v1348_v61 }
 0x552   :  { %1385 = vst [vmem:[%s2495_s4 + $0x30] sm:$0xff] %v1349_v7  ;;  %1386 = vst [vmem:[%s2495_s4 + $0x38] sm:$0xff] %v1350_v13 }
 0x553   :  { %v1235_v31 = vpop.permute.xlu1 %1234 }
 0x554   :  { %v1274_v0 = vmul.f32 %v1235_v31, %v2125_v1  ;;  %v1275_v44 = vmul.f32 %v1235_v31, %v2136_v45  ;;  %v1276_v58 = vmul.f32 %v1235_v31, %v2129_v39  ;;  %v1277_v12 = vmul.f32 %v1235_v31, %v2140_v10 }
 0x555   :  { %v1240_v22 = vpop.permute.xlu0 %1239 }
 0x556   :  { %v1278_v10 = vmul.f32 %v1240_v22, %v2147_v14  ;;  %v1279_v23 = vmul.f32 %v1240_v22, %v2153_v8  ;;  %v1280_v52 = vmul.f32 %v1240_v22, %v2149_v59  ;;  %v1281_v24 = vmul.f32 %v1240_v22, %v2155_v35 }
 0x557   :  { %v1311_v53 = vpop.permute.xlu1 %1310 }
 0x558   :  { %v1351_v3 = vadd.f32 %v1311_v53, %v1270_v15  ;;  %v1352_v5 = vadd.f32 %v1311_v53, %v1271_v43  ;;  %v1353_v55 = vadd.f32 %v1311_v53, %v1272_v16  ;;  %v1354_v37 = vadd.f32 %v1311_v53, %v1273_v63 }
 0x559   :  { %v1316_v47 = vpop.permute.xlu0 %1315 }
 0x55a   :  { %1387 = vst [vmem:[%s2495_s4 + $0x40] sm:$0xff] %v1351_v3  ;;  %1388 = vst [vmem:[%s2495_s4 + $0x48] sm:$0xff] %v1352_v5  ;;  %v1355_v27 = vadd.f32 %v1316_v47, %v1274_v0  ;;  %v1356_v41 = vadd.f32 %v1316_v47, %v1275_v44  ;;  %v1357_v42 = vadd.f32 %v1316_v47, %v1276_v58 }
 0x55b   :  { %1389 = vst [vmem:[%s2495_s4 + $0x50] sm:$0xff] %v1353_v55  ;;  %1390 = vst [vmem:[%s2495_s4 + $0x58] sm:$0xff] %v1354_v37  ;;  %v1358_v1 = vadd.f32 %v1316_v47, %v1277_v12  ;;  %v1245_v39 = vpop.permute.xlu1 %1244 }
 0x55c   :  { %1391 = vst [vmem:[%s2495_s4 + $0x60] sm:$0xff] %v1355_v27  ;;  %1392 = vst [vmem:[%s2495_s4 + $0x68] sm:$0xff] %v1356_v41  ;;  %v1282_v40 = vmul.f32 %v1245_v39, %v2166_v26  ;;  %v1283_v34 = vmul.f32 %v1245_v39, %v2173_v21  ;;  %v1284_v18 = vmul.f32 %v1245_v39, %v2170_v56 }
 0x55d   :  { %1393 = vst [vmem:[%s2495_s4 + $0x70] sm:$0xff] %v1357_v42  ;;  %1394 = vst [vmem:[%s2495_s4 + $0x78] sm:$0xff] %v1358_v1  ;;  %v1250_v45 = vpop.permute.xlu0 %1249  ;;  %v1285_v32 = vmul.f32 %v1245_v39, %v2176_v4 }
 0x55e   :  { %v1286_v6 = vmul.f32 %v1250_v45, %v2186_v36  ;;  %v1287_v30 = vmul.f32 %v1250_v45, %v2193_v51  ;;  %v1288_v61 = vmul.f32 %v1250_v45, %v2188_v9  ;;  %v1289_v7 = vmul.f32 %v1250_v45, %v2195_v33 }
 0x55f   :  { %v1321_v60 = vpop.permute.xlu1 %1320 }
 0x560   :  { %v1359_v19 = vadd.f32 %v1321_v60, %v1278_v10  ;;  %v1360_v28 = vadd.f32 %v1321_v60, %v1279_v23  ;;  %v1361_v38 = vadd.f32 %v1321_v60, %v1280_v52  ;;  %v1362_v48 = vadd.f32 %v1321_v60, %v1281_v24 }
 0x561   :  { %v1326_v14 = vpop.permute.xlu0 %1325 }
 0x562   :  { %1395 = vst [vmem:[%s2495_s4 + $0x80] sm:$0xff] %v1359_v19  ;;  %1396 = vst [vmem:[%s2495_s4 + $0x88] sm:$0xff] %v1360_v28  ;;  %v1363_v59 = vadd.f32 %v1326_v14, %v1282_v40  ;;  %v1364_v8 = vadd.f32 %v1326_v14, %v1283_v34  ;;  %v1365_v35 = vadd.f32 %v1326_v14, %v1284_v18 }
 0x563   :  { %1397 = vst [vmem:[%s2495_s4 + $0x90] sm:$0xff] %v1361_v38  ;;  %1398 = vst [vmem:[%s2495_s4 + $0x98] sm:$0xff] %v1362_v48  ;;  %v1366_v26 = vadd.f32 %v1326_v14, %v1285_v32 }
 0x564   :  { %1399 = vst [vmem:[%s2495_s4 + $0xa0] sm:$0xff] %v1363_v59  ;;  %1400 = vst [vmem:[%s2495_s4 + $0xa8] sm:$0xff] %v1364_v8 }
 0x565   :  { %1401 = vst [vmem:[%s2495_s4 + $0xb0] sm:$0xff] %v1365_v35  ;;  %1402 = vst [vmem:[%s2495_s4 + $0xb8] sm:$0xff] %v1366_v26  ;;  %v1260_v56 = vpop.permute.xlu0 %1259 }
 0x566   :  { %v1255_v21 = vpop.permute.xlu1 %1254  ;;  %v1294_v36 = vmul.f32 %v1260_v56, %v2222_v50  ;;  %v1295_v9 = vmul.f32 %v1260_v56, %v2235_v17  ;;  %v1296_v51 = vmul.f32 %v1260_v56, %v2227_v25  ;;  %v1297_v33 = vmul.f32 %v1260_v56, %v2245_v46 }
 0x567   :  { %v1290_v4 = vmul.f32 %v1255_v21, %v2206_v2  ;;  %v1291_v20 = vmul.f32 %v1255_v21, %v2213_v29  ;;  %v1292_v57 = vmul.f32 %v1255_v21, %v2210_v11  ;;  %v1293_v62 = vmul.f32 %v1255_v21, %v2215_v54 }
 0x56a   :  { %v1336_v13 = vpop.permute.xlu0 %1335  ;;  %v1331_v49 = vpop.permute.xlu1 %1330 }
 0x56b   :  { %v1371_v31 = vadd.f32 %v1336_v13, %v1290_v4  ;;  %v1372_v22 = vadd.f32 %v1336_v13, %v1291_v20  ;;  %v1373_v15 = vadd.f32 %v1336_v13, %v1292_v57  ;;  %v1374_v2 = vadd.f32 %v1336_v13, %v1293_v62 }
 0x56c   :  { %v1367_v43 = vadd.f32 %v1331_v49, %v1286_v6  ;;  %v1368_v29 = vadd.f32 %v1331_v49, %v1287_v30  ;;  %v1369_v16 = vadd.f32 %v1331_v49, %v1288_v61  ;;  %v1370_v11 = vadd.f32 %v1331_v49, %v1289_v7 }
 0x56d   :  { %1407 = vst [vmem:[%s2495_s4 + $0xe0] sm:$0xff] %v1371_v31  ;;  %1408 = vst [vmem:[%s2495_s4 + $0xe8] sm:$0xff] %v1372_v22 }
 0x56e   :  { %1409 = vst [vmem:[%s2495_s4 + $0xf0] sm:$0xff] %v1373_v15  ;;  %1410 = vst [vmem:[%s2495_s4 + $0xf8] sm:$0xff] %v1374_v2  ;;  %v1341_v54 = vpop.permute.xlu1 %1340 }
 0x56f   :  { %1403 = vst [vmem:[%s2495_s4 + $0xc0] sm:$0xff] %v1367_v43  ;;  %1404 = vst [vmem:[%s2495_s4 + $0xc8] sm:$0xff] %v1368_v29  ;;  %v1375_v50 = vadd.f32 %v1341_v54, %v1294_v36  ;;  %v1376_v25 = vadd.f32 %v1341_v54, %v1295_v9  ;;  %v1377_v17 = vadd.f32 %v1341_v54, %v1296_v51 }
 0x570   :  { %1405 = vst [vmem:[%s2495_s4 + $0xd0] sm:$0xff] %v1369_v16  ;;  %1406 = vst [vmem:[%s2495_s4 + $0xd8] sm:$0xff] %v1370_v11  ;;  %v1378_v46 = vadd.f32 %v1341_v54, %v1297_v33 }
 0x571   :  { %1411 = vst [vmem:[%s2495_s4 + $0x100] sm:$0xff] %v1375_v50  ;;  %1412 = vst [vmem:[%s2495_s4 + $0x108] sm:$0xff] %v1376_v25 }
 0x572   :  { %1413 = vst [vmem:[%s2495_s4 + $0x110] sm:$0xff] %v1377_v17  ;;  %1414 = vst [vmem:[%s2495_s4 + $0x118] sm:$0xff] %v1378_v46 }

</bundles_post_ra>
